<compile_context>
chip_gen: v7x
topology: tpu7x:2x2x1
jax: 0.10.0
libtpu: 0.0.40
codegen_flags: <defaults>
</compile_context>

<pallas_src>
import numpy as np
import jax
import jax.numpy as jnp
from jax import lax
from jax.experimental import pallas as pl
from jax.experimental.pallas import tpu as pltpu

# ----------------------------- configuration --------------------------------
B, L, D, H, DFF, MA = 2, 16, 32, 4, 64, 5   # batch, seq, d_model, heads, d_ff, moving_avg
E = D // H                                   # head dim
N_LAYERS = 2
EPS = 1e-5                                   # nn.LayerNorm default eps
BL = B * L
HBL = H * BL                                 # 128 -> lane-dense attention slab
NEG = -1e9
# Dropout layers are identity in eval mode.


def _moving_avg_matrix(length, ma):
    """series_decomp moving average: AvgPool1d(kernel=ma, stride=1) with
    replicate padding, expressed as a fixed (L, L) linear operator."""
    pad = (ma - 1) // 2
    w = np.zeros((length, length), np.float32)
    for t in range(length):
        for j in range(ma):
            s = min(max(t + j - pad, 0), length - 1)
            w[t, s] += 1.0 / ma
    return w


def _block_diag(block, n):
    k = block.shape[0]
    out = np.zeros((n * k, n * k), np.float32)
    for i in range(n):
        out[i * k:(i + 1) * k, i * k:(i + 1) * k] = block
    return out


def _head_select_mask():
    """(H*BL, D) 0/1: row block h keeps only feature columns of head h."""
    m = np.zeros((HBL, D), np.float32)
    for h in range(H):
        m[h * BL:(h + 1) * BL, h * E:(h + 1) * E] = 1.0
    return m


def _batch_addmask():
    """(BL, H*BL) additive mask: 0 where key batch == query batch, -1e9 else."""
    m = np.full((BL, HBL), NEG, np.float32)
    for b in range(B):
        for h in range(H):
            m[b * L:(b + 1) * L, h * BL + b * L:h * BL + (b + 1) * L] = 0.0
    return m


# (I - MA): residual part of series_decomp, block-diagonal over the folded batch.
_W_DECOMP = jnp.asarray(
    _block_diag(np.eye(L, dtype=np.float32) - _moving_avg_matrix(L, MA), B))
# (I - J/L): subtract-seq-mean step of my_Layernorm, block-diagonal over the batch.
_W_SEQMEAN = jnp.asarray(
    _block_diag(np.eye(L, dtype=np.float32) - np.full((L, L), 1.0 / L, np.float32), B))
# Head-selection mask for the replicated key/value slabs.
_HEAD_SEL = jnp.asarray(_head_select_mask())
# Additive cross-batch mask for the (BL, H*BL) score slab.
_ATTN_ADDMASK = jnp.asarray(_batch_addmask())
# Segment-sum operator: block-diagonal ones((BL,BL)) per head -> per-(query,head)
# softmax denominator broadcast across its 32-lane segment, via one MXU matmul.
_SEG_SUM = jnp.asarray(_block_diag(np.ones((BL, BL), np.float32), H))
# Plain moving-average operator for the pure-JAX reference.
_WMA_REF = jnp.asarray(_moving_avg_matrix(L, MA))


# ------------------------------ Pallas kernel --------------------------------
def fused_encoder_kernel(x_ref, wqkv_ref, bqkv_ref, wo_ref, bo_ref, w1_ref, w2_ref,
                         wdec_ref, wsm_ref, hsel_ref, amask_ref, segsum_ref,
                         g_ref, beta_ref, xo_ref, attn_ref):
    """Full Autoformer Encoder: N_LAYERS EncoderLayers + my_Layernorm, one call."""
    f32 = jnp.float32
    xb = x_ref[...]                        # (B*L, D)   batch folded into sublanes
    wdec = wdec_ref[...]                   # (B*L, B*L) block-diag (I - MA)
    hsel = hsel_ref[...]                   # (H*BL, D)  0/1 head-selection mask
    amask = amask_ref[...]                 # (BL, H*BL) additive cross-batch mask
    segsum = segsum_ref[...]               # (H*BL, H*BL) per-head segment summer

    for n in range(N_LAYERS):              # static layer loop (fused encoder)
        # fused Q/K/V projection: single MXU push (scale folded into Q host-side)
        qkv = jnp.dot(xb, wqkv_ref[n], preferred_element_type=f32) + bqkv_ref[n]
        q = qkv[:, 0 * D:1 * D]            # (BL, D)
        k = qkv[:, 1 * D:2 * D]
        v = qkv[:, 2 * D:3 * D]

        # Batched attention over ALL (batch, head) pairs as dense 2-D matmuls.
        # Keys/values replicated per head along sublanes and masked per head so
        # one (BL,D)x(H*BL,D)^T contraction yields every head's scores at once.
        k_sp = jnp.concatenate([k] * H, axis=0) * hsel        # (H*BL, D)
        v_sp = jnp.concatenate([v] * H, axis=0) * hsel        # (H*BL, D)

        s = lax.dot_general(q, k_sp, (((1,), (1,)), ((), ())),
                            preferred_element_type=f32)       # (BL, H*BL)
        s = s + amask                                          # kill cross-batch keys
        s = s - jnp.max(s, axis=-1, keepdims=True)             # one max pass
        p = jnp.exp(s)                                         # one exp pass
        denom = jnp.dot(p, segsum, preferred_element_type=f32) # per-(query,head) sums
        a = p * pl.reciprocal(denom, approx=True)              # probs, 128-lane dense
        attn_ref[n] = a                                        # one unmasked store

        # value aggregation + output projection: two full-width matmuls
        o = jnp.dot(a, v_sp, preferred_element_type=f32)       # (BL, D)
        new_x = jnp.dot(o, wo_ref[n], preferred_element_type=f32) + bo_ref[n]

        # residual + series_decomp 1:  res = (I - MA) @ (x + attn_out)
        xr = jnp.dot(wdec, xb + new_x, preferred_element_type=f32)
        # position-wise FFN: Conv1d(D->DFF, k=1, no bias), relu, Conv1d back
        y = jnp.maximum(jnp.dot(xr, w1_ref[n], preferred_element_type=f32), 0.0)
        y = jnp.dot(y, w2_ref[n], preferred_element_type=f32)
        # residual + series_decomp 2
        xb = jnp.dot(wdec, xr + y, preferred_element_type=f32)

    # my_Layernorm: LayerNorm over d_model, then subtract per-batch seq mean
    mu = jnp.mean(xb, axis=-1, keepdims=True)
    xc = xb - mu
    var = jnp.mean(xc * xc, axis=-1, keepdims=True)
    x_hat = xc * lax.rsqrt(var + EPS) * g_ref[...] + beta_ref[...]
    xo_ref[...] = jnp.dot(wsm_ref[...], x_hat, preferred_element_type=f32)


# ------------------------------- wrapper --------------------------------------
def _full_spec(shape):
    """Full-array block for the single-step grid."""
    zeros = (0,) * len(shape)
    return pl.BlockSpec(shape, lambda i, _z=zeros: _z)


@jax.jit
def encoder_forward(x, layer_params, norm_params):
    """Encoder.forward with conv_layers=None, attn_mask=None."""
    scale = 1.0 / (float(E) ** 0.5)
    # host-side weight fusion / stacking (hoisted by jit; runs once per compile)
    # NOTE: on v6e/v7x these could be cast to bf16 (MXU-native); kept f32 here to
    # hold the 1e-3 end-to-end tolerance — the MXU is idle at these shapes anyway.
    wqkv = jnp.stack([jnp.concatenate([p["wq"] * scale, p["wk"], p["wv"]], axis=1)
                      for p in layer_params])                       # (N, D, 3D)
    bqkv = jnp.stack([jnp.concatenate([p["bq"] * scale, p["bk"], p["bv"]], axis=1)
                      for p in layer_params])                       # (N, 1, 3D)
    wo = jnp.stack([p["wo"] for p in layer_params])                 # (N, D, D)
    bo = jnp.stack([p["bo"] for p in layer_params])                 # (N, 1, D)
    w1 = jnp.stack([p["w1"] for p in layer_params])                 # (N, D, DFF)
    w2 = jnp.stack([p["w2"] for p in layer_params])                 # (N, DFF, D)

    xb = x.reshape(BL, D)

    out_shape = (jax.ShapeDtypeStruct((BL, D), jnp.float32),
                 jax.ShapeDtypeStruct((N_LAYERS, BL, HBL), jnp.float32))

    in_arrays = (xb, wqkv, bqkv, wo, bo, w1, w2, _W_DECOMP, _W_SEQMEAN,
                 _HEAD_SEL, _ATTN_ADDMASK, _SEG_SUM,
                 norm_params["gamma"], norm_params["beta"])

    grid_spec = pltpu.PrefetchScalarGridSpec(
        num_scalar_prefetch=0,
        grid=(1,),                                   # single fused invocation
        in_specs=[_full_spec(a.shape) for a in in_arrays],
        out_specs=tuple(_full_spec(s.shape) for s in out_shape),
    )

    out_flat, attn_flat = pl.pallas_call(
        fused_encoder_kernel,
        out_shape=out_shape,
        grid_spec=grid_spec,
        compiler_params=pltpu.CompilerParams(dimension_semantics=("arbitrary",)),
    )(*in_arrays)

    out = out_flat.reshape(B, L, D)
    # (N, BL, H*BL) slab -> per-layer (B, H, L, L); cross-batch blocks are zero
    # by construction and simply dropped here (outside the kernel).
    a6 = attn_flat.reshape(N_LAYERS, B, L, H, B, L)
    attns = []
    for n in range(N_LAYERS):
        per_b = jnp.stack([a6[n, b, :, :, b, :] for b in range(B)], axis=0)  # (B, L, H, L)
        attns.append(per_b.transpose(0, 2, 1, 3))                            # (B, H, L, L)
    return out, attns


# ---------------------------- pure-JAX reference ------------------------------
def encoder_layer_ref(x, p):
    q = (x @ p["wq"] + p["bq"]).reshape(B, L, H, E)
    k = (x @ p["wk"] + p["bk"]).reshape(B, L, H, E)
    v = (x @ p["wv"] + p["bv"]).reshape(B, L, H, E)
    s = jnp.einsum("blhe,bshe->bhls", q, k) * (1.0 / (float(E) ** 0.5))
    a = jax.nn.softmax(s, axis=-1)
    o = jnp.einsum("bhls,bshe->blhe", a, v).reshape(B, L, D)
    new_x = o @ p["wo"] + p["bo"]
    xr = x + new_x
    xr = xr - jnp.einsum("ts,bsd->btd", _WMA_REF, xr)
    y = jnp.maximum(xr @ p["w1"], 0.0) @ p["w2"]
    z = xr + y
    return z - jnp.einsum("ts,bsd->btd", _WMA_REF, z), a


def my_layernorm_ref(x, gamma, beta):
    mu = jnp.mean(x, axis=-1, keepdims=True)
    var = jnp.mean((x - mu) ** 2, axis=-1, keepdims=True)
    x_hat = (x - mu) / jnp.sqrt(var + EPS) * gamma + beta
    return x_hat - jnp.mean(x_hat, axis=1, keepdims=True)


def encoder_ref(x, layer_params, norm_params):
    attns = []
    for p in layer_params:
        x, a = encoder_layer_ref(x, p)
        attns.append(a)
    return my_layernorm_ref(x, norm_params["gamma"], norm_params["beta"]), attns


# --------------------------------- main ---------------------------------------
def make_params(key):
    layer_params = []
    for _ in range(N_LAYERS):
        ks = jax.random.split(key, 11)
        key = ks[-1]
        p = {
            "wq": 0.02 * jax.random.normal(ks[0], (D, D), jnp.float32),
            "bq": 0.02 * jax.random.normal(ks[1], (1, D), jnp.float32),
            "wk": 0.02 * jax.random.normal(ks[2], (D, D), jnp.float32),
            "bk": 0.02 * jax.random.normal(ks[3], (1, D), jnp.float32),
            "wv": 0.02 * jax.random.normal(ks[4], (D, D), jnp.float32),
            "bv": 0.02 * jax.random.normal(ks[5], (1, D), jnp.float32),
            "wo": 0.02 * jax.random.normal(ks[6], (D, D), jnp.float32),
            "bo": 0.02 * jax.random.normal(ks[7], (1, D), jnp.float32),
            "w1": 0.02 * jax.random.normal(ks[8], (D, DFF), jnp.float32),  # Conv1d(D->DFF, k=1), no bias
            "w2": 0.02 * jax.random.normal(ks[9], (DFF, D), jnp.float32),  # Conv1d(DFF->D, k=1), no bias
        }
        layer_params.append(p)
    norm_params = {"gamma": jnp.ones((1, D), jnp.float32),
                   "beta": jnp.zeros((1, D), jnp.float32)}
    return layer_params, norm_params, key


if __name__ == "__main__":
    key = jax.random.PRNGKey(0)
    key, xkey = jax.random.split(key)
    x = jax.random.normal(xkey, (B, L, D), jnp.float32)

    layer_params, norm_params, _ = make_params(key)

    out, attns = encoder_forward(x, layer_params, norm_params)
    out = jax.block_until_ready(out)
    attns = [jax.block_until_ready(a) for a in attns]

    # correctness check against a pure-JAX reference of the same math
    ref_out, ref_attns = encoder_ref(x, layer_params, norm_params)
    np.testing.assert_allclose(np.asarray(out), np.asarray(ref_out), rtol=1e-3, atol=1e-3)
    for a, ra in zip(attns, ref_attns):
        np.testing.assert_allclose(np.asarray(a), np.asarray(ra), rtol=1e-3, atol=1e-3)

    print("KERNEL_OK")
</pallas_src>

<mosaic_0001>
module attributes {stable_mosaic.version = 11 : i64} {
  func.func @fused_encoder_kernel(%arg0: i32, %arg1: memref<32x32xf32, #tpu.memory_space<vmem>>, %arg2: memref<2x32x96xf32, #tpu.memory_space<vmem>>, %arg3: memref<2x1x96xf32, #tpu.memory_space<vmem>>, %arg4: memref<2x32x32xf32, #tpu.memory_space<vmem>>, %arg5: memref<2x1x32xf32, #tpu.memory_space<vmem>>, %arg6: memref<2x32x64xf32, #tpu.memory_space<vmem>>, %arg7: memref<2x64x32xf32, #tpu.memory_space<vmem>>, %arg8: memref<32x32xf32, #tpu.memory_space<vmem>>, %arg9: memref<32x32xf32, #tpu.memory_space<vmem>>, %arg10: memref<128x32xf32, #tpu.memory_space<vmem>>, %arg11: memref<32x128xf32, #tpu.memory_space<vmem>>, %arg12: memref<128x128xf32, #tpu.memory_space<vmem>>, %arg13: memref<1x32xf32, #tpu.memory_space<vmem>>, %arg14: memref<1x32xf32, #tpu.memory_space<vmem>>, %arg15: memref<32x32xf32, #tpu.memory_space<vmem>>, %arg16: memref<2x32x128xf32, #tpu.memory_space<vmem>>) attributes {dimension_semantics = [#tpu.dimension_semantics<arbitrary>], iteration_bounds = array<i64: 1>, scalar_prefetch = 0 : i64, scratch_operands = 0 : i64, tpu.core_type = #tpu.core_type<tc>, window_params = [{pipeline_mode = #tpu.pipeline_mode<synchronous>, transform_indices = @transform_0, window_bounds = array<i64: 32, 32>}, {pipeline_mode = #tpu.pipeline_mode<synchronous>, transform_indices = @transform_1, window_bounds = array<i64: 2, 32, 96>}, {pipeline_mode = #tpu.pipeline_mode<synchronous>, transform_indices = @transform_2, window_bounds = array<i64: 2, 1, 96>}, {pipeline_mode = #tpu.pipeline_mode<synchronous>, transform_indices = @transform_3, window_bounds = array<i64: 2, 32, 32>}, {pipeline_mode = #tpu.pipeline_mode<synchronous>, transform_indices = @transform_4, window_bounds = array<i64: 2, 1, 32>}, {pipeline_mode = #tpu.pipeline_mode<synchronous>, transform_indices = @transform_5, window_bounds = array<i64: 2, 32, 64>}, {pipeline_mode = #tpu.pipeline_mode<synchronous>, transform_indices = @transform_6, window_bounds = array<i64: 2, 64, 32>}, {pipeline_mode = #tpu.pipeline_mode<synchronous>, transform_indices = @transform_7, window_bounds = array<i64: 32, 32>}, {pipeline_mode = #tpu.pipeline_mode<synchronous>, transform_indices = @transform_8, window_bounds = array<i64: 32, 32>}, {pipeline_mode = #tpu.pipeline_mode<synchronous>, transform_indices = @transform_9, window_bounds = array<i64: 128, 32>}, {pipeline_mode = #tpu.pipeline_mode<synchronous>, transform_indices = @transform_10, window_bounds = array<i64: 32, 128>}, {pipeline_mode = #tpu.pipeline_mode<synchronous>, transform_indices = @transform_11, window_bounds = array<i64: 128, 128>}, {pipeline_mode = #tpu.pipeline_mode<synchronous>, transform_indices = @transform_12, window_bounds = array<i64: 1, 32>}, {pipeline_mode = #tpu.pipeline_mode<synchronous>, transform_indices = @transform_13, window_bounds = array<i64: 1, 32>}, {pipeline_mode = #tpu.pipeline_mode<synchronous>, transform_indices = @transform_14, window_bounds = array<i64: 32, 32>}, {pipeline_mode = #tpu.pipeline_mode<synchronous>, transform_indices = @transform_15, window_bounds = array<i64: 2, 32, 128>}]} {
    %c0 = arith.constant 0 : index
    %c0_0 = arith.constant 0 : index
    %0 = vector.load %arg1[%c0, %c0_0] : memref<32x32xf32, #tpu.memory_space<vmem>>, vector<32x32xf32>
    %c0_1 = arith.constant 0 : index
    %c0_2 = arith.constant 0 : index
    %1 = vector.load %arg8[%c0_1, %c0_2] : memref<32x32xf32, #tpu.memory_space<vmem>>, vector<32x32xf32>
    %c0_3 = arith.constant 0 : index
    %c0_4 = arith.constant 0 : index
    %2 = vector.load %arg10[%c0_3, %c0_4] : memref<128x32xf32, #tpu.memory_space<vmem>>, vector<128x32xf32>
    %c0_5 = arith.constant 0 : index
    %c0_6 = arith.constant 0 : index
    %3 = vector.load %arg11[%c0_5, %c0_6] : memref<32x128xf32, #tpu.memory_space<vmem>>, vector<32x128xf32>
    %c0_7 = arith.constant 0 : index
    %c0_8 = arith.constant 0 : index
    %4 = vector.load %arg12[%c0_7, %c0_8] : memref<128x128xf32, #tpu.memory_space<vmem>>, vector<128x128xf32>
    %c0_9 = arith.constant 0 : index
    %c0_10 = arith.constant 0 : index
    %c0_11 = arith.constant 0 : index
    %5 = vector.load %arg2[%c0_9, %c0_10, %c0_11] : memref<2x32x96xf32, #tpu.memory_space<vmem>>, vector<1x32x96xf32>
    %6 = vector.shape_cast %5 : vector<1x32x96xf32> to vector<32x96xf32>
    %cst = arith.constant dense<0.000000e+00> : vector<32x96xf32>
    %7 = tpu.matmul %0, %6, %cst {dimension_numbers = #tpu.dot_dimension_numbers<[1], [0], [0], [1], [0, 0, 1, 1], [], []>} : vector<32x32xf32>, vector<32x96xf32>, vector<32x96xf32> -> vector<32x96xf32>
    %c0_12 = arith.constant 0 : index
    %c0_13 = arith.constant 0 : index
    %c0_14 = arith.constant 0 : index
    %8 = vector.load %arg3[%c0_12, %c0_13, %c0_14] : memref<2x1x96xf32, #tpu.memory_space<vmem>>, vector<1x1x96xf32>
    %9 = vector.shape_cast %8 : vector<1x1x96xf32> to vector<1x96xf32>
    %10 = vector.broadcast %9 : vector<1x96xf32> to vector<32x96xf32>
    %11 = arith.addf %7, %10 : vector<32x96xf32>
    %12 = vector.extract_strided_slice %11 {offsets = [0, 0], sizes = [32, 32], strides = [1, 1]} : vector<32x96xf32> to vector<32x32xf32>
    %13 = vector.extract_strided_slice %11 {offsets = [0, 32], sizes = [32, 32], strides = [1, 1]} : vector<32x96xf32> to vector<32x32xf32>
    %14 = vector.extract_strided_slice %11 {offsets = [0, 64], sizes = [32, 32], strides = [1, 1]} : vector<32x96xf32> to vector<32x32xf32>
    %15 = tpu.concatenate %13, %13, %13, %13 in 0 : vector<32x32xf32>, vector<32x32xf32>, vector<32x32xf32>, vector<32x32xf32> -> vector<128x32xf32>
    %16 = arith.mulf %15, %2 : vector<128x32xf32>
    %17 = tpu.concatenate %14, %14, %14, %14 in 0 : vector<32x32xf32>, vector<32x32xf32>, vector<32x32xf32>, vector<32x32xf32> -> vector<128x32xf32>
    %18 = arith.mulf %17, %2 : vector<128x32xf32>
    %cst_15 = arith.constant dense<0.000000e+00> : vector<32x128xf32>
    %19 = tpu.matmul %12, %16, %cst_15 {dimension_numbers = #tpu.dot_dimension_numbers<[1], [1], [0], [0], [0, 0, 1, 0], [], []>} : vector<32x32xf32>, vector<128x32xf32>, vector<32x128xf32> -> vector<32x128xf32>
    %20 = arith.addf %19, %3 : vector<32x128xf32>
    %cst_16 = arith.constant dense<0xFF800000> : vector<32xf32>
    %21 = vector.multi_reduction <maximumf>, %20, %cst_16 [1] : vector<32x128xf32> to vector<32xf32>
    %22 = vector.shape_cast %21 : vector<32xf32> to vector<32x1xf32>
    %23 = vector.broadcast %22 : vector<32x1xf32> to vector<32x128xf32>
    %24 = arith.subf %20, %23 : vector<32x128xf32>
    %25 = math.exp %24 : vector<32x128xf32>
    %cst_17 = arith.constant dense<0.000000e+00> : vector<32x128xf32>
    %26 = tpu.matmul %25, %4, %cst_17 {dimension_numbers = #tpu.dot_dimension_numbers<[1], [0], [0], [1], [0, 0, 1, 1], [], []>} : vector<32x128xf32>, vector<128x128xf32>, vector<32x128xf32> -> vector<32x128xf32>
    %27 = tpu.reciprocal %26 {approx = true} : vector<32x128xf32> -> vector<32x128xf32>
    %28 = arith.mulf %25, %27 : vector<32x128xf32>
    %c0_18 = arith.constant 0 : index
    %c0_19 = arith.constant 0 : index
    %c0_20 = arith.constant 0 : index
    %29 = vector.load %arg16[%c0_18, %c0_19, %c0_20] : memref<2x32x128xf32, #tpu.memory_space<vmem>>, vector<1x32x128xf32>
    %30 = vector.shape_cast %29 : vector<1x32x128xf32> to vector<32x128xf32>
    %31 = vector.shape_cast %28 : vector<32x128xf32> to vector<1x32x128xf32>
    tpu.vector_store %arg16[%c0_18, %c0_19, %c0_20], %31 {strides = array<i32>} : memref<2x32x128xf32, #tpu.memory_space<vmem>>, vector<1x32x128xf32>,
    %cst_21 = arith.constant dense<0.000000e+00> : vector<32x32xf32>
    %32 = tpu.matmul %28, %18, %cst_21 {dimension_numbers = #tpu.dot_dimension_numbers<[1], [0], [0], [1], [0, 0, 1, 1], [], []>} : vector<32x128xf32>, vector<128x32xf32>, vector<32x32xf32> -> vector<32x32xf32>
    %c0_22 = arith.constant 0 : index
    %c0_23 = arith.constant 0 : index
    %c0_24 = arith.constant 0 : index
    %33 = vector.load %arg4[%c0_22, %c0_23, %c0_24] : memref<2x32x32xf32, #tpu.memory_space<vmem>>, vector<1x32x32xf32>
    %34 = vector.shape_cast %33 : vector<1x32x32xf32> to vector<32x32xf32>
    %cst_25 = arith.constant dense<0.000000e+00> : vector<32x32xf32>
    %35 = tpu.matmul %32, %34, %cst_25 {dimension_numbers = #tpu.dot_dimension_numbers<[1], [0], [0], [1], [0, 0, 1, 1], [], []>} : vector<32x32xf32>, vector<32x32xf32>, vector<32x32xf32> -> vector<32x32xf32>
    %c0_26 = arith.constant 0 : index
    %c0_27 = arith.constant 0 : index
    %c0_28 = arith.constant 0 : index
    %36 = vector.load %arg5[%c0_26, %c0_27, %c0_28] : memref<2x1x32xf32, #tpu.memory_space<vmem>>, vector<1x1x32xf32>
    %37 = vector.shape_cast %36 : vector<1x1x32xf32> to vector<1x32xf32>
    %38 = vector.broadcast %37 : vector<1x32xf32> to vector<32x32xf32>
    %39 = arith.addf %35, %38 : vector<32x32xf32>
    %40 = arith.addf %0, %39 : vector<32x32xf32>
    %cst_29 = arith.constant dense<0.000000e+00> : vector<32x32xf32>
    %41 = tpu.matmul %1, %40, %cst_29 {dimension_numbers = #tpu.dot_dimension_numbers<[1], [0], [0], [1], [0, 0, 1, 1], [], []>} : vector<32x32xf32>, vector<32x32xf32>, vector<32x32xf32> -> vector<32x32xf32>
    %c0_30 = arith.constant 0 : index
    %c0_31 = arith.constant 0 : index
    %c0_32 = arith.constant 0 : index
    %42 = vector.load %arg6[%c0_30, %c0_31, %c0_32] : memref<2x32x64xf32, #tpu.memory_space<vmem>>, vector<1x32x64xf32>
    %43 = vector.shape_cast %42 : vector<1x32x64xf32> to vector<32x64xf32>
    %cst_33 = arith.constant dense<0.000000e+00> : vector<32x64xf32>
    %44 = tpu.matmul %41, %43, %cst_33 {dimension_numbers = #tpu.dot_dimension_numbers<[1], [0], [0], [1], [0, 0, 1, 1], [], []>} : vector<32x32xf32>, vector<32x64xf32>, vector<32x64xf32> -> vector<32x64xf32>
    %cst_34 = arith.constant 0.000000e+00 : f32
    %45 = vector.broadcast %cst_34 : f32 to vector<32x64xf32>
    %46 = arith.maximumf %44, %45 : vector<32x64xf32>
    %c0_35 = arith.constant 0 : index
    %c0_36 = arith.constant 0 : index
    %c0_37 = arith.constant 0 : index
    %47 = vector.load %arg7[%c0_35, %c0_36, %c0_37] : memref<2x64x32xf32, #tpu.memory_space<vmem>>, vector<1x64x32xf32>
    %48 = vector.shape_cast %47 : vector<1x64x32xf32> to vector<64x32xf32>
    %cst_38 = arith.constant dense<0.000000e+00> : vector<32x32xf32>
    %49 = tpu.matmul %46, %48, %cst_38 {dimension_numbers = #tpu.dot_dimension_numbers<[1], [0], [0], [1], [0, 0, 1, 1], [], []>} : vector<32x64xf32>, vector<64x32xf32>, vector<32x32xf32> -> vector<32x32xf32>
    %50 = arith.addf %41, %49 : vector<32x32xf32>
    %cst_39 = arith.constant dense<0.000000e+00> : vector<32x32xf32>
    %51 = tpu.matmul %1, %50, %cst_39 {dimension_numbers = #tpu.dot_dimension_numbers<[1], [0], [0], [1], [0, 0, 1, 1], [], []>} : vector<32x32xf32>, vector<32x32xf32>, vector<32x32xf32> -> vector<32x32xf32>
    %c1 = arith.constant 1 : index
    %c0_40 = arith.constant 0 : index
    %c0_41 = arith.constant 0 : index
    %52 = vector.load %arg2[%c1, %c0_40, %c0_41] : memref<2x32x96xf32, #tpu.memory_space<vmem>>, vector<1x32x96xf32>
    %53 = vector.shape_cast %52 : vector<1x32x96xf32> to vector<32x96xf32>
    %cst_42 = arith.constant dense<0.000000e+00> : vector<32x96xf32>
    %54 = tpu.matmul %51, %53, %cst_42 {dimension_numbers = #tpu.dot_dimension_numbers<[1], [0], [0], [1], [0, 0, 1, 1], [], []>} : vector<32x32xf32>, vector<32x96xf32>, vector<32x96xf32> -> vector<32x96xf32>
    %c1_43 = arith.constant 1 : index
    %c0_44 = arith.constant 0 : index
    %c0_45 = arith.constant 0 : index
    %55 = vector.load %arg3[%c1_43, %c0_44, %c0_45] : memref<2x1x96xf32, #tpu.memory_space<vmem>>, vector<1x1x96xf32>
    %56 = vector.shape_cast %55 : vector<1x1x96xf32> to vector<1x96xf32>
    %57 = vector.broadcast %56 : vector<1x96xf32> to vector<32x96xf32>
    %58 = arith.addf %54, %57 : vector<32x96xf32>
    %59 = vector.extract_strided_slice %58 {offsets = [0, 0], sizes = [32, 32], strides = [1, 1]} : vector<32x96xf32> to vector<32x32xf32>
    %60 = vector.extract_strided_slice %58 {offsets = [0, 32], sizes = [32, 32], strides = [1, 1]} : vector<32x96xf32> to vector<32x32xf32>
    %61 = vector.extract_strided_slice %58 {offsets = [0, 64], sizes = [32, 32], strides = [1, 1]} : vector<32x96xf32> to vector<32x32xf32>
    %62 = tpu.concatenate %60, %60, %60, %60 in 0 : vector<32x32xf32>, vector<32x32xf32>, vector<32x32xf32>, vector<32x32xf32> -> vector<128x32xf32>
    %63 = arith.mulf %62, %2 : vector<128x32xf32>
    %64 = tpu.concatenate %61, %61, %61, %61 in 0 : vector<32x32xf32>, vector<32x32xf32>, vector<32x32xf32>, vector<32x32xf32> -> vector<128x32xf32>
    %65 = arith.mulf %64, %2 : vector<128x32xf32>
    %cst_46 = arith.constant dense<0.000000e+00> : vector<32x128xf32>
    %66 = tpu.matmul %59, %63, %cst_46 {dimension_numbers = #tpu.dot_dimension_numbers<[1], [1], [0], [0], [0, 0, 1, 0], [], []>} : vector<32x32xf32>, vector<128x32xf32>, vector<32x128xf32> -> vector<32x128xf32>
    %67 = arith.addf %66, %3 : vector<32x128xf32>
    %cst_47 = arith.constant dense<0xFF800000> : vector<32xf32>
    %68 = vector.multi_reduction <maximumf>, %67, %cst_47 [1] : vector<32x128xf32> to vector<32xf32>
    %69 = vector.shape_cast %68 : vector<32xf32> to vector<32x1xf32>
    %70 = vector.broadcast %69 : vector<32x1xf32> to vector<32x128xf32>
    %71 = arith.subf %67, %70 : vector<32x128xf32>
    %72 = math.exp %71 : vector<32x128xf32>
    %cst_48 = arith.constant dense<0.000000e+00> : vector<32x128xf32>
    %73 = tpu.matmul %72, %4, %cst_48 {dimension_numbers = #tpu.dot_dimension_numbers<[1], [0], [0], [1], [0, 0, 1, 1], [], []>} : vector<32x128xf32>, vector<128x128xf32>, vector<32x128xf32> -> vector<32x128xf32>
    %74 = tpu.reciprocal %73 {approx = true} : vector<32x128xf32> -> vector<32x128xf32>
    %75 = arith.mulf %72, %74 : vector<32x128xf32>
    %c1_49 = arith.constant 1 : index
    %c0_50 = arith.constant 0 : index
    %c0_51 = arith.constant 0 : index
    %76 = vector.load %arg16[%c1_49, %c0_50, %c0_51] : memref<2x32x128xf32, #tpu.memory_space<vmem>>, vector<1x32x128xf32>
    %77 = vector.shape_cast %76 : vector<1x32x128xf32> to vector<32x128xf32>
    %78 = vector.shape_cast %75 : vector<32x128xf32> to vector<1x32x128xf32>
    tpu.vector_store %arg16[%c1_49, %c0_50, %c0_51], %78 {strides = array<i32>} : memref<2x32x128xf32, #tpu.memory_space<vmem>>, vector<1x32x128xf32>,
    %cst_52 = arith.constant dense<0.000000e+00> : vector<32x32xf32>
    %79 = tpu.matmul %75, %65, %cst_52 {dimension_numbers = #tpu.dot_dimension_numbers<[1], [0], [0], [1], [0, 0, 1, 1], [], []>} : vector<32x128xf32>, vector<128x32xf32>, vector<32x32xf32> -> vector<32x32xf32>
    %c1_53 = arith.constant 1 : index
    %c0_54 = arith.constant 0 : index
    %c0_55 = arith.constant 0 : index
    %80 = vector.load %arg4[%c1_53, %c0_54, %c0_55] : memref<2x32x32xf32, #tpu.memory_space<vmem>>, vector<1x32x32xf32>
    %81 = vector.shape_cast %80 : vector<1x32x32xf32> to vector<32x32xf32>
    %cst_56 = arith.constant dense<0.000000e+00> : vector<32x32xf32>
    %82 = tpu.matmul %79, %81, %cst_56 {dimension_numbers = #tpu.dot_dimension_numbers<[1], [0], [0], [1], [0, 0, 1, 1], [], []>} : vector<32x32xf32>, vector<32x32xf32>, vector<32x32xf32> -> vector<32x32xf32>
    %c1_57 = arith.constant 1 : index
    %c0_58 = arith.constant 0 : index
    %c0_59 = arith.constant 0 : index
    %83 = vector.load %arg5[%c1_57, %c0_58, %c0_59] : memref<2x1x32xf32, #tpu.memory_space<vmem>>, vector<1x1x32xf32>
    %84 = vector.shape_cast %83 : vector<1x1x32xf32> to vector<1x32xf32>
    %85 = vector.broadcast %84 : vector<1x32xf32> to vector<32x32xf32>
    %86 = arith.addf %82, %85 : vector<32x32xf32>
    %87 = arith.addf %51, %86 : vector<32x32xf32>
    %cst_60 = arith.constant dense<0.000000e+00> : vector<32x32xf32>
    %88 = tpu.matmul %1, %87, %cst_60 {dimension_numbers = #tpu.dot_dimension_numbers<[1], [0], [0], [1], [0, 0, 1, 1], [], []>} : vector<32x32xf32>, vector<32x32xf32>, vector<32x32xf32> -> vector<32x32xf32>
    %c1_61 = arith.constant 1 : index
    %c0_62 = arith.constant 0 : index
    %c0_63 = arith.constant 0 : index
    %89 = vector.load %arg6[%c1_61, %c0_62, %c0_63] : memref<2x32x64xf32, #tpu.memory_space<vmem>>, vector<1x32x64xf32>
    %90 = vector.shape_cast %89 : vector<1x32x64xf32> to vector<32x64xf32>
    %cst_64 = arith.constant dense<0.000000e+00> : vector<32x64xf32>
    %91 = tpu.matmul %88, %90, %cst_64 {dimension_numbers = #tpu.dot_dimension_numbers<[1], [0], [0], [1], [0, 0, 1, 1], [], []>} : vector<32x32xf32>, vector<32x64xf32>, vector<32x64xf32> -> vector<32x64xf32>
    %cst_65 = arith.constant 0.000000e+00 : f32
    %92 = vector.broadcast %cst_65 : f32 to vector<32x64xf32>
    %93 = arith.maximumf %91, %92 : vector<32x64xf32>
    %c1_66 = arith.constant 1 : index
    %c0_67 = arith.constant 0 : index
    %c0_68 = arith.constant 0 : index
    %94 = vector.load %arg7[%c1_66, %c0_67, %c0_68] : memref<2x64x32xf32, #tpu.memory_space<vmem>>, vector<1x64x32xf32>
    %95 = vector.shape_cast %94 : vector<1x64x32xf32> to vector<64x32xf32>
    %cst_69 = arith.constant dense<0.000000e+00> : vector<32x32xf32>
    %96 = tpu.matmul %93, %95, %cst_69 {dimension_numbers = #tpu.dot_dimension_numbers<[1], [0], [0], [1], [0, 0, 1, 1], [], []>} : vector<32x64xf32>, vector<64x32xf32>, vector<32x32xf32> -> vector<32x32xf32>
    %97 = arith.addf %88, %96 : vector<32x32xf32>
    %cst_70 = arith.constant dense<0.000000e+00> : vector<32x32xf32>
    %98 = tpu.matmul %1, %97, %cst_70 {dimension_numbers = #tpu.dot_dimension_numbers<[1], [0], [0], [1], [0, 0, 1, 1], [], []>} : vector<32x32xf32>, vector<32x32xf32>, vector<32x32xf32> -> vector<32x32xf32>
    %cst_71 = arith.constant dense<0.000000e+00> : vector<32xf32>
    %99 = vector.multi_reduction <add>, %98, %cst_71 [1] : vector<32x32xf32> to vector<32xf32>
    %100 = vector.shape_cast %99 : vector<32xf32> to vector<32x1xf32>
    %cst_72 = arith.constant 3.200000e+01 : f32
    %101 = vector.broadcast %cst_72 : f32 to vector<32x1xf32>
    %102 = arith.divf %100, %101 : vector<32x1xf32>
    %103 = vector.broadcast %102 : vector<32x1xf32> to vector<32x32xf32>
    %104 = arith.subf %98, %103 : vector<32x32xf32>
    %105 = arith.mulf %104, %104 : vector<32x32xf32>
    %cst_73 = arith.constant dense<0.000000e+00> : vector<32xf32>
    %106 = vector.multi_reduction <add>, %105, %cst_73 [1] : vector<32x32xf32> to vector<32xf32>
    %107 = vector.shape_cast %106 : vector<32xf32> to vector<32x1xf32>
    %cst_74 = arith.constant 3.200000e+01 : f32
    %108 = vector.broadcast %cst_74 : f32 to vector<32x1xf32>
    %109 = arith.divf %107, %108 : vector<32x1xf32>
    %cst_75 = arith.constant 9.99999974E-6 : f32
    %110 = vector.broadcast %cst_75 : f32 to vector<32x1xf32>
    %111 = arith.addf %109, %110 : vector<32x1xf32>
    %112 = math.rsqrt %111 : vector<32x1xf32>
    %113 = vector.broadcast %112 : vector<32x1xf32> to vector<32x32xf32>
    %114 = arith.mulf %104, %113 : vector<32x32xf32>
    %c0_76 = arith.constant 0 : index
    %c0_77 = arith.constant 0 : index
    %115 = vector.load %arg13[%c0_76, %c0_77] : memref<1x32xf32, #tpu.memory_space<vmem>>, vector<1x32xf32>
    %116 = vector.broadcast %115 : vector<1x32xf32> to vector<32x32xf32>
    %117 = arith.mulf %114, %116 : vector<32x32xf32>
    %c0_78 = arith.constant 0 : index
    %c0_79 = arith.constant 0 : index
    %118 = vector.load %arg14[%c0_78, %c0_79] : memref<1x32xf32, #tpu.memory_space<vmem>>, vector<1x32xf32>
    %119 = vector.broadcast %118 : vector<1x32xf32> to vector<32x32xf32>
    %120 = arith.addf %117, %119 : vector<32x32xf32>
    %c0_80 = arith.constant 0 : index
    %c0_81 = arith.constant 0 : index
    %121 = vector.load %arg9[%c0_80, %c0_81] : memref<32x32xf32, #tpu.memory_space<vmem>>, vector<32x32xf32>
    %cst_82 = arith.constant dense<0.000000e+00> : vector<32x32xf32>
    %122 = tpu.matmul %121, %120, %cst_82 {dimension_numbers = #tpu.dot_dimension_numbers<[1], [0], [0], [1], [0, 0, 1, 1], [], []>} : vector<32x32xf32>, vector<32x32xf32>, vector<32x32xf32> -> vector<32x32xf32>
    %c0_83 = arith.constant 0 : index
    %c0_84 = arith.constant 0 : index
    %123 = vector.load %arg15[%c0_83, %c0_84] : memref<32x32xf32, #tpu.memory_space<vmem>>, vector<32x32xf32>
    tpu.vector_store %arg15[%c0_83, %c0_84], %122 {strides = array<i32>} : memref<32x32xf32, #tpu.memory_space<vmem>>, vector<32x32xf32>,
    return
  }
  func.func @transform_0(%arg0: i32) -> (i32, i32) {
    %c0_i32 = arith.constant 0 : i32
    %c0_i32_0 = arith.constant 0 : i32
    %c0_i32_1 = arith.constant 0 : i32
    return %c0_i32, %c0_i32_0 : i32, i32
  }
  func.func @transform_1(%arg0: i32) -> (i32, i32, i32) {
    %c0_i32 = arith.constant 0 : i32
    %c0_i32_0 = arith.constant 0 : i32
    %c0_i32_1 = arith.constant 0 : i32
    %c0_i32_2 = arith.constant 0 : i32
    return %c0_i32, %c0_i32_0, %c0_i32_1 : i32, i32, i32
  }
  func.func @transform_2(%arg0: i32) -> (i32, i32, i32) {
    %c0_i32 = arith.constant 0 : i32
    %c0_i32_0 = arith.constant 0 : i32
    %c0_i32_1 = arith.constant 0 : i32
    %c0_i32_2 = arith.constant 0 : i32
    return %c0_i32, %c0_i32_0, %c0_i32_1 : i32, i32, i32
  }
  func.func @transform_3(%arg0: i32) -> (i32, i32, i32) {
    %c0_i32 = arith.constant 0 : i32
    %c0_i32_0 = arith.constant 0 : i32
    %c0_i32_1 = arith.constant 0 : i32
    %c0_i32_2 = arith.constant 0 : i32
    return %c0_i32, %c0_i32_0, %c0_i32_1 : i32, i32, i32
  }
  func.func @transform_4(%arg0: i32) -> (i32, i32, i32) {
    %c0_i32 = arith.constant 0 : i32
    %c0_i32_0 = arith.constant 0 : i32
    %c0_i32_1 = arith.constant 0 : i32
    %c0_i32_2 = arith.constant 0 : i32
    return %c0_i32, %c0_i32_0, %c0_i32_1 : i32, i32, i32
  }
  func.func @transform_5(%arg0: i32) -> (i32, i32, i32) {
    %c0_i32 = arith.constant 0 : i32
    %c0_i32_0 = arith.constant 0 : i32
    %c0_i32_1 = arith.constant 0 : i32
    %c0_i32_2 = arith.constant 0 : i32
    return %c0_i32, %c0_i32_0, %c0_i32_1 : i32, i32, i32
  }
  func.func @transform_6(%arg0: i32) -> (i32, i32, i32) {
    %c0_i32 = arith.constant 0 : i32
    %c0_i32_0 = arith.constant 0 : i32
    %c0_i32_1 = arith.constant 0 : i32
    %c0_i32_2 = arith.constant 0 : i32
    return %c0_i32, %c0_i32_0, %c0_i32_1 : i32, i32, i32
  }
  func.func @transform_7(%arg0: i32) -> (i32, i32) {
    %c0_i32 = arith.constant 0 : i32
    %c0_i32_0 = arith.constant 0 : i32
    %c0_i32_1 = arith.constant 0 : i32
    return %c0_i32, %c0_i32_0 : i32, i32
  }
  func.func @transform_8(%arg0: i32) -> (i32, i32) {
    %c0_i32 = arith.constant 0 : i32
    %c0_i32_0 = arith.constant 0 : i32
    %c0_i32_1 = arith.constant 0 : i32
    return %c0_i32, %c0_i32_0 : i32, i32
  }
  func.func @transform_9(%arg0: i32) -> (i32, i32) {
    %c0_i32 = arith.constant 0 : i32
    %c0_i32_0 = arith.constant 0 : i32
    %c0_i32_1 = arith.constant 0 : i32
    return %c0_i32, %c0_i32_0 : i32, i32
  }
  func.func @transform_10(%arg0: i32) -> (i32, i32) {
    %c0_i32 = arith.constant 0 : i32
    %c0_i32_0 = arith.constant 0 : i32
    %c0_i32_1 = arith.constant 0 : i32
    return %c0_i32, %c0_i32_0 : i32, i32
  }
  func.func @transform_11(%arg0: i32) -> (i32, i32) {
    %c0_i32 = arith.constant 0 : i32
    %c0_i32_0 = arith.constant 0 : i32
    %c0_i32_1 = arith.constant 0 : i32
    return %c0_i32, %c0_i32_0 : i32, i32
  }
  func.func @transform_12(%arg0: i32) -> (i32, i32) {
    %c0_i32 = arith.constant 0 : i32
    %c0_i32_0 = arith.constant 0 : i32
    %c0_i32_1 = arith.constant 0 : i32
    return %c0_i32, %c0_i32_0 : i32, i32
  }
  func.func @transform_13(%arg0: i32) -> (i32, i32) {
    %c0_i32 = arith.constant 0 : i32
    %c0_i32_0 = arith.constant 0 : i32
    %c0_i32_1 = arith.constant 0 : i32
    return %c0_i32, %c0_i32_0 : i32, i32
  }
  func.func @transform_14(%arg0: i32) -> (i32, i32) {
    %c0_i32 = arith.constant 0 : i32
    %c0_i32_0 = arith.constant 0 : i32
    %c0_i32_1 = arith.constant 0 : i32
    return %c0_i32, %c0_i32_0 : i32, i32
  }
  func.func @transform_15(%arg0: i32) -> (i32, i32, i32) {
    %c0_i32 = arith.constant 0 : i32
    %c0_i32_0 = arith.constant 0 : i32
    %c0_i32_1 = arith.constant 0 : i32
    %c0_i32_2 = arith.constant 0 : i32
    return %c0_i32, %c0_i32_0, %c0_i32_1 : i32, i32, i32
  }
}

</mosaic_0001>

<bundles_post_ra>
// kernel: encoder_forward.1
= control target key start
LH: loop header
LB: loop body
LE: loop exit
PB: predicated region body
PF: predicated region fallthrough
CT: control target
= control target key end

     0   :  { %vm105_vm0 = vcmask 261120   ;;  %s3945_s30 = smov 32   ;;  %s4983_s0 = inlined_call_operand.vmem [shape: f32[32,32], index: 0, kind: input, shape index: {}]   ;;  %s4984_s1 = inlined_call_operand.vmem [shape: f32[2,32,96], index: 1, kind: input, shape index: {}]   ;;  %s4985_s2 = inlined_call_operand.vmem [shape: f32[2,1,96], index: 2, kind: input, shape index: {}]   ;;  %s4986_s3 = inlined_call_operand.vmem [shape: f32[2,32,32], index: 3, kind: input, shape index: {}]   ;;  %s4987_s4 = inlined_call_operand.vmem [shape: f32[2,1,32], index: 4, kind: input, shape index: {}]   ;;  %s4988_s5 = inlined_call_operand.vmem [shape: f32[2,32,64], index: 5, kind: input, shape index: {}]   ;;  %s4989_s6 = inlined_call_operand.vmem [shape: f32[2,64,32], index: 6, kind: input, shape index: {}]   ;;  %s4990_s7 = inlined_call_operand.vmem [shape: f32[32,32], index: 7, kind: input, shape index: {}]   ;;  %s4991_s8 = inlined_call_operand.vmem [shape: f32[32,32], index: 8, kind: input, shape index: {}]   ;;  %s4992_s9 = inlined_call_operand.vmem [shape: f32[128,32], index: 9, kind: input, shape index: {}]   ;;  %s4993_s10 = inlined_call_operand.vmem [shape: f32[32,128], index: 10, kind: input, shape index: {}]   ;;  %s4994_s11 = inlined_call_operand.vmem [shape: f32[128,128], index: 11, kind: input, shape index: {}]   ;;  %s4995_s12 = inlined_call_operand.vmem [shape: f32[1,32], index: 12, kind: input, shape index: {}]   ;;  %s4996_s13 = inlined_call_operand.vmem [shape: f32[1,32], index: 13, kind: input, shape index: {}]   ;;  %s4997_s14 = inlined_call_operand.hbm [shape: f32[32,32], index: 14, kind: output, shape index: {0}]   ;;  %s4998_s15 = inlined_call_operand.vmem [shape: f32[2,32,128], index: 15, kind: output, shape index: {1}]  }
   0x1   :  { %v94_v0 = vld [vmem:[%s4984_s1] sm:$0xff]  ;;  %v95_v1 = vld [vmem:[%s4984_s1 + $0x8] sm:$0xff]  ;;  %v96_v2 = vld [vmem:[%s4984_s1 + $0x10] sm:$0xff] }
   0x2   :  { %v3367_v3 = vpack.c.bf16 %v95_v1, %v94_v0  ;;  %v97_v4 = vld [vmem:[%s4984_s1 + $0x18] sm:$0xff]  ;;  %v4046_v5 = vld [vmem:[%s4983_s0] sm:$0xff]  ;;  %v4053_v7 = vld [vmem:[%s4992_s9 + $0x10] sm:$0xff] }
   0x3   :  { %v3371_v6 = vpack.c.bf16 %v97_v4, %v96_v2  ;;  %2949 = vmatprep.mubr.msk.f32.mxu0 %vm105_vm0, %v4046_v5  ;;  %223 = vrot.lane.b32.xlu1 %v4053_v7, %s3945_s30  ;;  %v4060_v8 = vld [vmem:[%s4992_s9] sm:$0xff]  ;;  %v4067_v9 = vld [vmem:[%s4992_s9 + $0x18] sm:$0xff]  ;;  %v4072_v10 = vld [vmem:[%s4992_s9 + $0x8] sm:$0xff] }
   0x4   :  { %3368 = vmatprep.subr.bf16.mxu0 %v3367_v3  ;;  %219 = vrot.lane.b32.xlu0 %v4060_v8, %s3945_s30  ;;  %v4079_v11 = vld [vmem:[%s4983_s0 + $0x8] sm:$0xff] }
   0x5   :  { %3370 = vmatpush3.bf16.msra.mxu0 %v3367_v3  ;;  %v4086_v12 = vld [vmem:[%s4992_s9 + $0x28] sm:$0xff] }
   0x6   :  { %3372 = vmatprep.subr.bf16.mxu0 %v3371_v6 }
   0x7   :  { %225 = vrot.lane.b32.xlu1 %v4067_v9, %s3945_s30 }
   0x8   :  { %221 = vrot.lane.b32.xlu0 %v4072_v10, %s3945_s30 }
   0x9   :  { %3374 = vmatpush3.bf16.msra.mxu0 %v3371_v6 }
   0xa   :  { %21 = vsyncpa [#allocation3], 0  ;;  %v4091_v13 = vld [vmem:[%s4983_s0 + $0x10] sm:$0xff]  ;;  %v4096_v14 = vld [vmem:[%s4992_s9 + $0x20] sm:$0xff]  ;;  %s3946_s22 = smov 96   ;;  %s3947_s21 = smov 64  }
   0xb   :  { %229 = vrot.lane.b32.xlu1 %v4086_v12, %s3945_s30  ;;  %v4107_v15 = vld [vmem:[%s4983_s0 + $0x18] sm:$0xff]  ;;  %v4119_v17 = vld [vmem:[%s4992_s9 + $0x30] sm:$0xff]  ;;  %v4130_v18 = vld [vmem:[%s4992_s9 + $0x48] sm:$0xff]  ;;  %vm1112_vm2 = vcmask 523264  }
   0xc   :  { %2950 = vmatmul.mubr.msk.f32.vlgmr.msra.gmra.mrb[0].mxu0 %vm105_vm0, %v4079_v11  ;;  %227 = vrot.lane.b32.xlu0 %v4096_v14, %s3945_s30  ;;  %v4114_v16 = vld [vmem:[%s4992_s9 + $0x38] sm:$0xff]  ;;  %v4135_v19 = vld [vmem:[%s4992_s9 + $0x40] sm:$0xff]  ;;  %v4149_v21 = vld [vmem:[%s4992_s9 + $0x50] sm:$0xff] }
   0xd   :  { %2952 = vmatprep.mubr.msk.f32.mxu0 %vm105_vm0, %v4091_v13  ;;  %v4144_v20 = vld [vmem:[%s4992_s9 + $0x58] sm:$0xff]  ;;  %v4158_v22 = vld [vmem:[%s4992_s9 + $0x68] sm:$0xff]  ;;  %v4163_v23 = vld [vmem:[%s4992_s9 + $0x60] sm:$0xff] }
   0xe   :  { %v4172_v24 = vld [vmem:[%s4992_s9 + $0x78] sm:$0xff]  ;;  %v4177_v25 = vld [vmem:[%s4992_s9 + $0x70] sm:$0xff]  ;;  %v2585_v35 = vld [vmem:[%s4985_s2] ss:$0 sm:$0xff] }
   0xf   :  { %233 = vrot.lane.b32.xlu1 %v4114_v16, %s3945_s30  ;;  %vm4270_vm1 = vmpackc.low %vm105_vm0, %vm105_vm0 }
  0x10   :  { %2953 = vmatmul.mubr.msk.f32.gmra.mrb[2].mxu0 %vm105_vm0, %v4107_v15  ;;  %231 = vrot.lane.b32.xlu0 %v4119_v17, %s3945_s30 }
  0x13   :  { %237 = vrot.lane.b32.xlu1 %v4130_v18, %s3945_s30 }
  0x14   :  { %235 = vrot.lane.b32.xlu0 %v4135_v19, %s3945_s30 }
  0x17   :  { %241 = vrot.lane.b32.xlu1 %v4144_v20, %s3945_s30 }
  0x18   :  { %239 = vrot.lane.b32.xlu0 %v4149_v21, %s3945_s30 }
  0x1b   :  { %245 = vrot.lane.b32.xlu1 %v4158_v22, %s3945_s30 }
  0x1c   :  { %243 = vrot.lane.b32.xlu0 %v4163_v23, %s3945_s30 }
  0x1f   :  { %249 = vrot.lane.b32.xlu1 %v4172_v24, %s3945_s30 }
  0x20   :  { %247 = vrot.lane.b32.xlu0 %v4177_v25, %s3945_s30 }
  0x75   :  { %v4183_v26 = vpop.permute.xlu1 %223 }
  0x76   :  { %v4185_v27 = vpop.permute.xlu0 %219 }
  0x79   :  { %v4187_v28 = vpop.permute.xlu1 %225 }
  0x7a   :  { %v4189_v29 = vpop.permute.xlu0 %221 }
  0x7d   :  { %v4191_v30 = vpop.permute.xlu1 %229 }
  0x7e   :  { %v4193_v31 = vpop.permute.xlu0 %227 }
  0x81   :  { %v4195_v32 = vpop.permute.xlu1 %233 }
  0x82   :  { %v4197_v33 = vpop.permute.xlu0 %231 }
  0x85   :  { %v4199_v34 = vpop.permute.xlu1 %237 }
  0x86   :  { %v4204_v36 = vpop.permute.xlu0 %235 }
  0x89   :  { %v4212_v42 = vpop.permute.xlu1 %241 }
  0x8a   :  { %v4218_v45 = vpop.permute.xlu0 %239 }
  0x8d   :  { %v4237_v56 = vpop.permute.xlu1 %245 }
  0x8e   :  { %v4243_v61 = vpop.permute.xlu0 %243 }
  0x91   :  { %v4255_v4 = vpop.permute.xlu1 %249 }
  0x92   :  { %v4257_v6 = vpop.permute.xlu0 %247 }
  0xdf   :  { %v2951_v37 = vpop.f32.mrb[0].mxu0 }
  0xe0   :  { %v4206_v38 = vadd.f32 %v2951_v37, %v2585_v35  ;;  %v184_v39 = vpop.f32.mrb[1].mxu0 }
  0xe1   :  { %v4208_v40 = vadd.f32 %v2585_v35, %v184_v39 }
  0xe2   :  { %v268_v41 = vmul.f32 %v4189_v29, %v4206_v38  ;;  %v272_v51 = vmul.f32 %v4191_v30, %v4206_v38  ;;  %v276_v60 = vmul.f32 %v4199_v34, %v4206_v38  ;;  %v280_v63 = vmul.f32 %v4237_v56, %v4206_v38 }
  0xe3   :  { %v2954_v43 = vpop.f32.mrb[2].mxu0  ;;  %2987 = vmatprep.mubr.msk.f32.mxu1 %vm105_vm0, %v4208_v40  ;;  %v267_v44 = vmul.f32 %v4185_v27, %v4208_v40  ;;  %v271_v50 = vmul.f32 %v4193_v31, %v4208_v40  ;;  %v275_v59 = vmul.f32 %v4204_v36, %v4208_v40  ;;  %v279_v0 = vmul.f32 %v4243_v61, %v4208_v40 }
  0xe4   :  { %v4220_v46 = vadd.f32 %v2954_v43, %v2585_v35  ;;  %v194_v47 = vpop.f32.mrb[3].mxu0 }
  0xe5   :  { %v4222_v48 = vadd.f32 %v2585_v35, %v194_v47  ;;  %v3721_v49 = vpack.i.bf16 %v268_v41, %v267_v44  ;;  %v3731_v58 = vpack.i.bf16 %v272_v51, %v271_v50  ;;  %v3741_v1 = vpack.i.bf16 %v276_v60, %v275_v59 }
  0xe6   :  { %v270_v52 = vmul.f32 %v4187_v28, %v4220_v46  ;;  %v274_v55 = vmul.f32 %v4195_v32, %v4220_v46  ;;  %v278_v3 = vmul.f32 %v4212_v42, %v4220_v46  ;;  %v3751_v35 = vpack.i.bf16 %v280_v63, %v279_v0 }
  0xe7   :  { %3722 = vrot.lane.b32.xlu0 %v3721_v49, %s3946_s22  ;;  %v269_v53 = vmul.f32 %v4183_v26, %v4222_v48  ;;  %v273_v54 = vmul.f32 %v4197_v33, %v4222_v48  ;;  %v277_v2 = vmul.f32 %v4218_v45, %v4222_v48  ;;  %v282_v37 = vmul.f32 %v4255_v4, %v4220_v46 }
  0xe8   :  { %v281_v39 = vmul.f32 %v4257_v6, %v4222_v48 }
  0xe9   :  { %v3726_v57 = vpack.i.bf16 %v270_v52, %v269_v53  ;;  %v3736_v62 = vpack.i.bf16 %v274_v55, %v273_v54  ;;  %v3746_v41 = vpack.i.bf16 %v278_v3, %v277_v2 }
  0xea   :  { %v3756_v43 = vpack.i.bf16 %v282_v37, %v281_v39 }
  0xeb   :  { %3727 = vrot.lane.b32.xlu1 %v3726_v57, %s3946_s22  ;;  %3732 = vrot.lane.b32.xlu0 %v3731_v58, %s3946_s22 }
  0xef   :  { %3737 = vrot.lane.b32.xlu1 %v3736_v62, %s3946_s22  ;;  %3742 = vrot.lane.b32.xlu0 %v3741_v1, %s3946_s22 }
  0xf3   :  { %3747 = vrot.lane.b32.xlu1 %v3746_v41, %s3946_s22  ;;  %3752 = vrot.lane.b32.xlu0 %v3751_v35, %s3946_s22 }
  0xf7   :  { %3757 = vrot.lane.b32.xlu1 %v3756_v43, %s3946_s22 }
 0x159   :  { %v3723_v44 = vpop.permute.xlu0 %3722 }
 0x15a   :  { %v3725_v47 = vunpack.i.h.bf16 %v3723_v44  ;;  %v3724_v49 = vunpack.i.l.bf16 %v3723_v44 }
 0x15c   :  { %v3375_v51 = vpack.c.bf16 %v3725_v47, %v3724_v49 }
 0x15d   :  { %v3728_v52 = vpop.permute.xlu1 %3727  ;;  %v3733_v55 = vpop.permute.xlu0 %3732 }
 0x15e   :  { %v3730_v53 = vunpack.i.h.bf16 %v3728_v52  ;;  %v3729_v54 = vunpack.i.l.bf16 %v3728_v52  ;;  %3377 = vmatprep.subr.msk.bf16.mxu1 %vm4270_vm1, %v3375_v51  ;;  %v3735_v58 = vunpack.i.h.bf16 %v3733_v55  ;;  %v3734_v59 = vunpack.i.l.bf16 %v3733_v55 }
 0x15f   :  { %3380 = vmatpush3.bf16.xpose.msk.msra.mxu1 %vm4270_vm1, %v3375_v51 }
 0x160   :  { %v3381_v57 = vpack.c.bf16 %v3730_v53, %v3729_v54  ;;  %v3387_v60 = vpack.c.bf16 %v3735_v58, %v3734_v59  ;;  %v78_v58 = vld [vmem:[%s4994_s11] sm:$0xff]  ;;  %v79_v59 = vld [vmem:[%s4994_s11 + $0x8] sm:$0xff] }
 0x161   :  { %v3738_v62 = vpop.permute.xlu1 %3737  ;;  %v3743_v2 = vpop.permute.xlu0 %3742 }
 0x162   :  { %3383 = vmatprep.subr.msk.bf16.mxu1 %vm4270_vm1, %v3381_v57  ;;  %v3740_v63 = vunpack.i.h.bf16 %v3738_v62  ;;  %v3739_v0 = vunpack.i.l.bf16 %v3738_v62  ;;  %v3745_v3 = vunpack.i.h.bf16 %v3743_v2  ;;  %v3744_v35 = vunpack.i.l.bf16 %v3743_v2  ;;  %v83_v2 = vld [vmem:[%s4994_s11 + $0x28] sm:$0xff] }
 0x163   :  { %v4321_v62 = vpack.c.bf16 %v79_v59, %v78_v58  ;;  %v86_v59 = vld [vmem:[%s4994_s11 + $0x40] sm:$0xff] }
 0x164   :  { %v3393_v1 = vpack.c.bf16 %v3740_v63, %v3739_v0  ;;  %v3399_v37 = vpack.c.bf16 %v3745_v3, %v3744_v35  ;;  %v81_v63 = vld [vmem:[%s4994_s11 + $0x18] sm:$0xff]  ;;  %v84_v35 = vld [vmem:[%s4994_s11 + $0x30] sm:$0xff] }
 0x165   :  { %v3748_v39 = vpop.permute.xlu1 %3747  ;;  %v3753_v47 = vpop.permute.xlu0 %3752  ;;  %3424 = vmatprep.subr.bf16.mxu0 %v4321_v62 }
 0x166   :  { %v3750_v41 = vunpack.i.h.bf16 %v3748_v39  ;;  %v3749_v43 = vunpack.i.l.bf16 %v3748_v39  ;;  %v3755_v49 = vunpack.i.h.bf16 %v3753_v47  ;;  %v3754_v51 = vunpack.i.l.bf16 %v3753_v47  ;;  %3426 = vmatpush3.bf16.msra.mxu0 %v4321_v62 }
 0x167   :  { %3386 = vmatpush3.bf16.xpose.msk.msra.mxu1 %vm4270_vm1, %v3381_v57 }
 0x168   :  { %3389 = vmatprep.subr.msk.bf16.mxu1 %vm4270_vm1, %v3387_v60  ;;  %v3405_v44 = vpack.c.bf16 %v3750_v41, %v3749_v43  ;;  %v3411_v52 = vpack.c.bf16 %v3755_v49, %v3754_v51  ;;  %v4355_v41 = vld [vmem:[%s4993_s10 + $0x8] sm:$0xff]  ;;  %v4360_v43 = vld [vmem:[%s4993_s10] sm:$0xff] }
 0x169   :  { %v3758_v53 = vpop.permute.xlu1 %3757 }
 0x16a   :  { %v3760_v54 = vunpack.i.h.bf16 %v3758_v53  ;;  %v3759_v55 = vunpack.i.l.bf16 %v3758_v53 }
 0x16c   :  { %v3417_v57 = vpack.c.bf16 %v3760_v54, %v3759_v55 }
 0x16f   :  { %3392 = vmatpush3.bf16.xpose.msk.msra.mxu1 %vm4270_vm1, %v3387_v60  ;;  %v80_v60 = vld [vmem:[%s4994_s11 + $0x10] sm:$0xff] }
 0x170   :  { %3395 = vmatprep.subr.msk.bf16.mxu1 %vm4270_vm1, %v3393_v1  ;;  %v4326_v0 = vpack.c.bf16 %v81_v63, %v80_v60  ;;  %v87_v60 = vld [vmem:[%s4994_s11 + $0x48] sm:$0xff] }
 0x171   :  { %v4382_v63 = vpack.c.bf16 %v87_v60, %v86_v59 }
 0x172   :  { %3428 = vmatprep.subr.bf16.mxu0 %v4326_v0 }
 0x173   :  { %3430 = vmatpush3.bf16.msra.mxu0 %v4326_v0 }
 0x177   :  { %3398 = vmatpush3.bf16.xpose.msk.msra.mxu1 %vm4270_vm1, %v3393_v1  ;;  %v82_v1 = vld [vmem:[%s4994_s11 + $0x20] sm:$0xff] }
 0x178   :  { %3401 = vmatprep.subr.msk.bf16.mxu1 %vm4270_vm1, %v3399_v37  ;;  %v4337_v3 = vpack.c.bf16 %v83_v2, %v82_v1  ;;  %v88_v1 = vld [vmem:[%s4994_s11 + $0x50] sm:$0xff]  ;;  %v89_v2 = vld [vmem:[%s4994_s11 + $0x58] sm:$0xff] }
 0x17a   :  { %3432 = vmatprep.subr.bf16.mxu0 %v4337_v3 }
 0x17b   :  { %3434 = vmatpush3.bf16.msra.mxu0 %v4337_v3 }
 0x17f   :  { %3404 = vmatpush3.bf16.xpose.msk.msra.mxu1 %vm4270_vm1, %v3399_v37  ;;  %v85_v37 = vld [vmem:[%s4994_s11 + $0x38] sm:$0xff] }
 0x180   :  { %3407 = vmatprep.subr.msk.bf16.mxu1 %vm4270_vm1, %v3405_v44  ;;  %v4347_v39 = vpack.c.bf16 %v85_v37, %v84_v35  ;;  %v4394_v35 = vpack.c.bf16 %v89_v2, %v88_v1  ;;  %v91_v37 = vld [vmem:[%s4994_s11 + $0x68] sm:$0xff] }
 0x182   :  { %3436 = vmatprep.subr.bf16.mxu0 %v4347_v39 }
 0x183   :  { %3438 = vmatpush3.bf16.msra.mxu0 %v4347_v39 }
 0x184   :  { %3440 = vmatprep.subr.bf16.mxu0 %v4382_v63 }
 0x187   :  { %3410 = vmatpush3.bf16.xpose.msk.msra.mxu1 %vm4270_vm1, %v3405_v44  ;;  %3442 = vmatpush3.bf16.msra.mxu0 %v4382_v63 }
 0x188   :  { %3413 = vmatprep.subr.msk.bf16.mxu1 %vm4270_vm1, %v3411_v52  ;;  %3444 = vmatprep.subr.bf16.mxu0 %v4394_v35 }
 0x18b   :  { %3446 = vmatpush3.bf16.msra.mxu0 %v4394_v35 }
 0x18f   :  { %3416 = vmatpush3.bf16.xpose.msk.msra.mxu1 %vm4270_vm1, %v3411_v52  ;;  %v4367_v52 = vld [vmem:[%s4993_s10 + $0x10] sm:$0xff] }
 0x190   :  { %3419 = vmatprep.subr.msk.bf16.mxu1 %vm4270_vm1, %v3417_v57 }
 0x197   :  { %3422 = vmatpush3.bf16.xpose.msk.msra.mxu1 %vm4270_vm1, %v3417_v57  ;;  %v4373_v57 = vld [vmem:[%s4993_s10 + $0x18] sm:$0xff] }
 0x19e   :  { %2988 = vmatmul.mubr.msk.f32.vlgmr.msra.gmra.mrb[0].mxu1 %vm105_vm0, %v4206_v38 }
 0x19f   :  { %2990 = vmatprep.mubr.msk.f32.mxu1 %vm105_vm0, %v4222_v48 }
 0x1a2   :  { %2991 = vmatmul.mubr.msk.f32.gmra.mrb[2].mxu1 %vm105_vm0, %v4220_v46 }
 0x271   :  { %v2989_v44 = vpop.f32.mrb[0].mxu1 }
 0x272   :  { %v511_v47 = vadd.f32 %v2989_v44, %v4355_v41  ;;  %v505_v49 = vpop.f32.mrb[1].mxu1 }
 0x273   :  { %v506_v51 = vadd.f32 %v505_v49, %v4360_v43  ;;  %v93_v49 = vld [vmem:[%s4994_s11 + $0x78] sm:$0xff] }
 0x274   :  { %526 = vmax.xlane.f32.xlu1 %v511_v47 }
 0x275   :  { %v2992_v53 = vpop.f32.mrb[2].mxu1  ;;  %524 = vmax.xlane.f32.xlu0 %v506_v51 }
 0x276   :  { %v515_v54 = vpop.f32.mrb[3].mxu1  ;;  %v521_v58 = vadd.f32 %v2992_v53, %v4373_v57 }
 0x277   :  { %v516_v55 = vadd.f32 %v515_v54, %v4367_v52 }
 0x279   :  { %528 = vmax.xlane.f32.xlu0 %v516_v55 }
 0x27d   :  { %530 = vmax.xlane.f32.xlu0 %v521_v58 }
 0x285   :  { %283 = vrot.lane.b32.xlu1 %v4060_v8, %s3947_s21  ;;  %v90_v8 = vld [vmem:[%s4994_s11 + $0x60] sm:$0xff] }
 0x286   :  { %v4406_v44 = vpack.c.bf16 %v91_v37, %v90_v8 }
 0x288   :  { %3448 = vmatprep.subr.bf16.mxu0 %v4406_v44 }
 0x289   :  { %287 = vrot.lane.b32.xlu1 %v4053_v7, %s3947_s21  ;;  %3450 = vmatpush3.bf16.msra.mxu0 %v4406_v44  ;;  %v92_v7 = vld [vmem:[%s4994_s11 + $0x70] sm:$0xff] }
 0x28a   :  { %v4418_v53 = vpack.c.bf16 %v93_v49, %v92_v7 }
 0x28c   :  { %3452 = vmatprep.subr.bf16.mxu0 %v4418_v53 }
 0x28d   :  { %289 = vrot.lane.b32.xlu1 %v4067_v9, %s3947_s21  ;;  %3454 = vmatpush3.bf16.msra.mxu0 %v4418_v53 }
 0x291   :  { %293 = vrot.lane.b32.xlu1 %v4086_v12, %s3947_s21 }
 0x293   :  { %285 = vrot.lane.b32.xlu0 %v4072_v10, %s3947_s21 }
 0x295   :  { %297 = vrot.lane.b32.xlu1 %v4114_v16, %s3947_s21 }
 0x297   :  { %291 = vrot.lane.b32.xlu0 %v4096_v14, %s3947_s21 }
 0x299   :  { %301 = vrot.lane.b32.xlu1 %v4130_v18, %s3947_s21 }
 0x29b   :  { %295 = vrot.lane.b32.xlu0 %v4119_v17, %s3947_s21 }
 0x29d   :  { %305 = vrot.lane.b32.xlu1 %v4144_v20, %s3947_s21 }
 0x29f   :  { %299 = vrot.lane.b32.xlu0 %v4135_v19, %s3947_s21 }
 0x2a1   :  { %309 = vrot.lane.b32.xlu1 %v4158_v22, %s3947_s21 }
 0x2a3   :  { %303 = vrot.lane.b32.xlu0 %v4149_v21, %s3947_s21 }
 0x2a5   :  { %313 = vrot.lane.b32.xlu1 %v4172_v24, %s3947_s21 }
 0x2a7   :  { %307 = vrot.lane.b32.xlu0 %v4163_v23, %s3947_s21 }
 0x2ab   :  { %311 = vrot.lane.b32.xlu0 %v4177_v25, %s3947_s21 }
 0x301   :  { %v527_v9 = vpop.xlane.xlu1 %526 }
 0x302   :  { %v533_v10 = vsub.f32 %v511_v47, %v527_v9  ;;  %v525_v12 = vpop.xlane.xlu0 %524 }
 0x303   :  { %v532_v14 = vsub.f32 %v506_v51, %v525_v12 }
 0x304   :  { %v538_v16 = vmul.f32 1.442695, %v533_v10 }
 0x305   :  { %v536_v17 = vmul.f32 1.442695, %v532_v14  ;;  %v4448_v18 = vpop.permute.xlu1 %283 }
 0x306   :  { %v529_v19 = vpop.xlane.xlu0 %528 }
 0x307   :  { %3881 = vpow2.f32 %v536_v17  ;;  %v534_v20 = vsub.f32 %v516_v55, %v529_v19  ;;  %v331_v55 = vmul.f32 %v4448_v18, %v4208_v40 }
 0x308   :  { %3883 = vpow2.f32 %v538_v16 }
 0x309   :  { %v540_v21 = vmul.f32 1.442695, %v534_v20  ;;  %v4450_v22 = vpop.permute.xlu1 %287 }
 0x30a   :  { %v531_v24 = vpop.xlane.xlu0 %530  ;;  %v333_v47 = vmul.f32 %v4450_v22, %v4222_v48 }
 0x30b   :  { %3885 = vpow2.f32 %v540_v21  ;;  %v535_v23 = vsub.f32 %v521_v58, %v531_v24 }
 0x30d   :  { %v542_v54 = vmul.f32 1.442695, %v535_v23  ;;  %v4452_v25 = vpop.permute.xlu1 %289 }
 0x30e   :  { %5008 = vst [vmem:[#allocation5_spill] sm:$0xff] %v4452_v25  ;;  %v334_v51 = vmul.f32 %v4452_v25, %v4220_v46  ;;  %v4458_v59 = vpop.permute.xlu0 %285 }
 0x30f   :  { %3887 = vpow2.f32 %v542_v54  ;;  %v332_v60 = vmul.f32 %v4458_v59, %v4206_v38 }
 0x310   :  { %v3766_v1 = vpack.i.bf16 %v334_v51, %v333_v47 }
 0x311   :  { %v4464_v58 = vpop.eup %3881  ;;  %v3761_v2 = vpack.i.bf16 %v332_v60, %v331_v55  ;;  %v4466_v8 = vpop.permute.xlu1 %293 }
 0x312   :  { %v4468_v37 = vpop.eup %3883  ;;  %v336_v7 = vmul.f32 %v4466_v8, %v4206_v38  ;;  %3767 = vrot.lane.b32.xlu1 %v3766_v1, %s3947_s21  ;;  %3025 = vmatprep.mubr.f32.mxu0 %v4464_v58  ;;  %v4474_v49 = vpop.permute.xlu0 %291 }
 0x313   :  { %v335_v9 = vmul.f32 %v4474_v49, %v4208_v40  ;;  %3026 = vmatmul.mubr.f32.vlgmr.msra.gmra.mrb[4].mxu0 %v4468_v37  ;;  %3762 = vrot.lane.b32.xlu0 %v3761_v2, %s3947_s21 }
 0x315   :  { %v4480_v10 = vpop.eup %3885  ;;  %v3771_v12 = vpack.i.bf16 %v336_v7, %v335_v9  ;;  %v4482_v14 = vpop.permute.xlu1 %297 }
 0x316   :  { %v338_v16 = vmul.f32 %v4482_v14, %v4220_v46  ;;  %3028 = vmatprep.mubr.f32.mxu0 %v4480_v10  ;;  %v4487_v17 = vpop.permute.xlu0 %295 }
 0x317   :  { %v337_v19 = vmul.f32 %v4487_v17, %v4222_v48  ;;  %3772 = vrot.lane.b32.xlu0 %v3771_v12, %s3947_s21 }
 0x319   :  { %v4492_v20 = vpop.eup %3887  ;;  %v3776_v21 = vpack.i.bf16 %v338_v16, %v337_v19  ;;  %v4494_v24 = vpop.permute.xlu1 %301 }
 0x31a   :  { %5009 = vst [vmem:[#allocation6_spill] sm:$0xff] %v4494_v24  ;;  %v340_v23 = vmul.f32 %v4494_v24, %v4206_v38  ;;  %3029 = vmatmul.mubr.f32.gmra.mrb[6].mxu0 %v4492_v20  ;;  %v4499_v54 = vpop.permute.xlu0 %299 }
 0x31b   :  { %5010 = vst [vmem:[#allocation7_spill] sm:$0xff] %v4499_v54  ;;  %v339_v47 = vmul.f32 %v4499_v54, %v4208_v40  ;;  %3777 = vrot.lane.b32.xlu1 %v3776_v21, %s3947_s21 }
 0x31d   :  { %v3781_v51 = vpack.i.bf16 %v340_v23, %v339_v47  ;;  %v4504_v55 = vpop.permute.xlu1 %305 }
 0x31e   :  { %v342_v60 = vmul.f32 %v4504_v55, %v4220_v46  ;;  %v4508_v1 = vpop.permute.xlu0 %303 }
 0x31f   :  { %v341_v2 = vmul.f32 %v4508_v1, %v4222_v48  ;;  %3782 = vrot.lane.b32.xlu0 %v3781_v51, %s3947_s21 }
 0x321   :  { %v3786_v7 = vpack.i.bf16 %v342_v60, %v341_v2  ;;  %v4513_v9 = vpop.permute.xlu1 %309  ;;  %v791_v2 = vld [vmem:[%s4986_s3 + $0x8] sm:$0xff] }
 0x322   :  { %5011 = vst [vmem:[#allocation8_spill] sm:$0xff] %v4513_v9  ;;  %v344_v12 = vmul.f32 %v4513_v9, %v4206_v38  ;;  %v4517_v16 = vpop.permute.xlu0 %307 }
 0x323   :  { %5012 = vst [vmem:[#allocation9_spill] sm:$0xff] %v4517_v16  ;;  %v343_v19 = vmul.f32 %v4517_v16, %v4208_v40  ;;  %3787 = vrot.lane.b32.xlu1 %v3786_v7, %s3947_s21  ;;  %v790_v40 = vld [vmem:[%s4986_s3] sm:$0xff] }
 0x324   :  { %v3487_v7 = vpack.c.bf16 %v791_v2, %v790_v40 }
 0x325   :  { %v3791_v21 = vpack.i.bf16 %v344_v12, %v343_v19  ;;  %v4522_v23 = vpop.permute.xlu1 %313 }
 0x326   :  { %5013 = vst [vmem:[#allocation10_spill] sm:$0xff] %v4522_v23  ;;  %v346_v47 = vmul.f32 %v4522_v23, %v4220_v46  ;;  %v4526_v51 = vpop.permute.xlu0 %311  ;;  %v792_v46 = vld [vmem:[%s4986_s3 + $0x10] sm:$0xff]  ;;  %3488 = vmatprep.subr.bf16.mxu1 %v3487_v7 }
 0x327   :  { %5014 = vst [vmem:[#allocation11_spill] sm:$0xff] %v4526_v51  ;;  %v345_v60 = vmul.f32 %v4526_v51, %v4222_v48  ;;  %3792 = vrot.lane.b32.xlu0 %v3791_v21, %s3947_s21  ;;  %v793_v48 = vld [vmem:[%s4986_s3 + $0x18] sm:$0xff]  ;;  %3490 = vmatpush3.bf16.msra.mxu1 %v3487_v7 }
 0x328   :  { %v3491_v12 = vpack.c.bf16 %v793_v48, %v792_v46 }
 0x329   :  { %v3796_v38 = vpack.i.bf16 %v346_v47, %v345_v60 }
 0x32a   :  { %3492 = vmatprep.subr.bf16.mxu1 %v3491_v12 }
 0x32b   :  { %3797 = vrot.lane.b32.xlu1 %v3796_v38, %s3947_s21  ;;  %3494 = vmatpush3.bf16.msra.mxu1 %v3491_v12 }
 0x384   :  { %v3768_v19 = vpop.permute.xlu1 %3767 }
 0x385   :  { %v3763_v21 = vpop.permute.xlu0 %3762  ;;  %v3770_v47 = vunpack.i.h.bf16 %v3768_v19  ;;  %v3769_v60 = vunpack.i.l.bf16 %v3768_v19 }
 0x386   :  { %v3765_v38 = vunpack.i.h.bf16 %v3763_v21  ;;  %v3764_v9 = vunpack.i.l.bf16 %v3763_v21 }
 0x387   :  { %v3459_v54 = vpack.c.bf16 %v3770_v47, %v3769_v60 }
 0x388   :  { %v3455_v16 = vpack.c.bf16 %v3765_v38, %v3764_v9 }
 0x389   :  { %v3773_v24 = vpop.permute.xlu0 %3772 }
 0x38a   :  { %v3775_v23 = vunpack.i.h.bf16 %v3773_v24  ;;  %v3774_v40 = vunpack.i.l.bf16 %v3773_v24  ;;  %3456 = vmatprep.subr.bf16.mxu0 %v3455_v16 }
 0x38b   :  { %3458 = vmatpush3.bf16.msra.mxu0 %v3455_v16 }
 0x38c   :  { %3460 = vmatprep.subr.bf16.mxu0 %v3459_v54  ;;  %v3463_v46 = vpack.c.bf16 %v3775_v23, %v3774_v40 }
 0x38d   :  { %v3778_v2 = vpop.permute.xlu1 %3777 }
 0x38e   :  { %v3780_v48 = vunpack.i.h.bf16 %v3778_v2  ;;  %v3779_v7 = vunpack.i.l.bf16 %v3778_v2 }
 0x38f   :  { %3462 = vmatpush3.bf16.msra.mxu0 %v3459_v54 }
 0x390   :  { %3464 = vmatprep.subr.bf16.mxu0 %v3463_v46  ;;  %v3467_v12 = vpack.c.bf16 %v3780_v48, %v3779_v7 }
 0x391   :  { %v3783_v51 = vpop.permute.xlu0 %3782 }
 0x392   :  { %v3785_v25 = vunpack.i.h.bf16 %v3783_v51  ;;  %v3784_v19 = vunpack.i.l.bf16 %v3783_v51 }
 0x393   :  { %3466 = vmatpush3.bf16.msra.mxu0 %v3463_v46 }
 0x394   :  { %3468 = vmatprep.subr.bf16.mxu0 %v3467_v12  ;;  %v3471_v21 = vpack.c.bf16 %v3785_v25, %v3784_v19 }
 0x395   :  { %v3788_v9 = vpop.permute.xlu1 %3787 }
 0x396   :  { %v3790_v47 = vunpack.i.h.bf16 %v3788_v9  ;;  %v3789_v60 = vunpack.i.l.bf16 %v3788_v9 }
 0x397   :  { %3470 = vmatpush3.bf16.msra.mxu0 %v3467_v12 }
 0x398   :  { %3472 = vmatprep.subr.bf16.mxu0 %v3471_v21  ;;  %v3475_v16 = vpack.c.bf16 %v3790_v47, %v3789_v60 }
 0x399   :  { %v3793_v24 = vpop.permute.xlu0 %3792 }
 0x39a   :  { %v3795_v38 = vunpack.i.h.bf16 %v3793_v24  ;;  %v3794_v23 = vunpack.i.l.bf16 %v3793_v24 }
 0x39b   :  { %3474 = vmatpush3.bf16.msra.mxu0 %v3471_v21 }
 0x39c   :  { %3476 = vmatprep.subr.bf16.mxu0 %v3475_v16  ;;  %v3479_v40 = vpack.c.bf16 %v3795_v38, %v3794_v23 }
 0x39d   :  { %v3798_v54 = vpop.permute.xlu1 %3797 }
 0x39e   :  { %v3800_v2 = vunpack.i.h.bf16 %v3798_v54  ;;  %v3799_v48 = vunpack.i.l.bf16 %v3798_v54  ;;  %v999_v54 = vld [vmem:[%s4988_s5] sm:$0xff] }
 0x39f   :  { %3478 = vmatpush3.bf16.msra.mxu0 %v3475_v16 }
 0x3a0   :  { %3480 = vmatprep.subr.bf16.mxu0 %v3479_v40  ;;  %v3483_v51 = vpack.c.bf16 %v3800_v2, %v3799_v48  ;;  %v1001_v2 = vld [vmem:[%s4988_s5 + $0x10] sm:$0xff] }
 0x3a3   :  { %3482 = vmatpush3.bf16.msra.mxu0 %v3479_v40  ;;  %v1000_v40 = vld [vmem:[%s4988_s5 + $0x8] sm:$0xff] }
 0x3a4   :  { %3484 = vmatprep.subr.bf16.mxu0 %v3483_v51  ;;  %v3503_v48 = vpack.c.bf16 %v1000_v40, %v999_v54  ;;  %v1105_v54 = vld [vmem:[%s4989_s6 + $0x8] sm:$0xff]  ;;  %v1106_v40 = vld [vmem:[%s4989_s6 + $0x10] sm:$0xff] }
 0x3a6   :  { %3504 = vmatprep.subr.bf16.mxu1 %v3503_v48 }
 0x3a7   :  { %3486 = vmatpush3.bf16.msra.mxu0 %v3483_v51  ;;  %v1002_v51 = vld [vmem:[%s4988_s5 + $0x18] sm:$0xff] }
 0x3e6   :  { %v3027_v25 = vpop.f32.mrb[4].mxu0 }
 0x3e7   :  { %3889 = vrcp.f32 %v3027_v25  ;;  %v610_v46 = vpop.f32.mrb[5].mxu0  ;;  %v3507_v25 = vpack.c.bf16 %v1002_v51, %v1001_v2 }
 0x3e8   :  { %3891 = vrcp.f32 %v610_v46  ;;  %v2610_v46 = vld [vmem:[%s4987_s4] ss:$0 sm:$0xff] }
 0x3ed   :  { %v3030_v7 = vpop.f32.mrb[6].mxu0 }
 0x3ee   :  { %3893 = vrcp.f32 %v3030_v7  ;;  %v620_v12 = vpop.f32.mrb[7].mxu0 }
 0x3ef   :  { %3895 = vrcp.f32 %v620_v12 }
 0x3f1   :  { %v3890_v19 = vpop.eup %3889 }
 0x3f2   :  { %v3892_v9 = vpop.eup %3891  ;;  %v634_v21 = vmul.f32 %v3890_v19, %v4468_v37 }
 0x3f3   :  { %v633_v47 = vmul.f32 %v3892_v9, %v4464_v58 }
 0x3f4   :  { %638 = vst [vmem:[%s4998_s15 + $0x8] sm:$0xff] %v634_v21 }
 0x3f5   :  { %637 = vst [vmem:[%s4998_s15] sm:$0xff] %v633_v47  ;;  %3063 = vmatprep.mubr.f32.mxu0 %v633_v47 }
 0x3f6   :  { %3064 = vmatmul.mubr.f32.vlgmr.msra.gmra.mrb[8].mxu0 %v634_v21 }
 0x3f8   :  { %v3894_v60 = vpop.eup %3893 }
 0x3f9   :  { %v3896_v24 = vpop.eup %3895  ;;  %v636_v16 = vmul.f32 %v3894_v60, %v4492_v20 }
 0x3fa   :  { %v635_v38 = vmul.f32 %v3896_v24, %v4480_v10  ;;  %v4567_v10 = vld [vmem:[%s4990_s7] sm:$0xff] }
 0x3fb   :  { %640 = vst [vmem:[%s4998_s15 + $0x18] sm:$0xff] %v636_v16 }
 0x3fc   :  { %639 = vst [vmem:[%s4998_s15 + $0x10] sm:$0xff] %v635_v38  ;;  %3066 = vmatprep.mubr.f32.mxu0 %v635_v38 }
 0x3fd   :  { %3067 = vmatmul.mubr.f32.gmra.mrb[10].mxu0 %v636_v16 }
 0x3fe   :  { %3091 = vmatprep.mubr.msk.f32.mxu0 %vm105_vm0, %v4567_v10 }
 0x4c9   :  { %v3065_v58 = vpop.f32.mrb[8].mxu0 }
 0x4ca   :  { %v771_v37 = vpop.f32.mrb[9].mxu0 }
 0x4cb   :  { %3077 = vmatprep.mubr.msk.f32.mxu1 %vm105_vm0, %v771_v37 }
 0x4cc   :  { %3078 = vmatmul.mubr.msk.f32.vlgmr.msra.gmra.mrb[4].mxu1 %vm105_vm0, %v3065_v58 }
 0x4cd   :  { %3506 = vmatpush3.bf16.msra.mxu1 %v3503_v48  ;;  %v1107_v48 = vld [vmem:[%s4989_s6 + $0x18] sm:$0xff] }
 0x4ce   :  { %3508 = vmatprep.subr.bf16.mxu1 %v3507_v25  ;;  %v3515_v51 = vpack.c.bf16 %v1107_v48, %v1106_v40 }
 0x4d0   :  { %v3068_v23 = vpop.f32.mrb[10].mxu0 }
 0x4d1   :  { %v781_v20 = vpop.f32.mrb[11].mxu0  ;;  %3510 = vmatpush3.bf16.msra.mxu1 %v3507_v25  ;;  %v1108_v25 = vld [vmem:[%s4989_s6 + $0x20] sm:$0xff] }
 0x4d2   :  { %3080 = vmatprep.mubr.msk.f32.mxu1 %vm105_vm0, %v781_v20 }
 0x4d3   :  { %3081 = vmatmul.mubr.msk.f32.gmra.mrb[6].mxu1 %vm105_vm0, %v3068_v23 }
 0x59f   :  { %v3079_v7 = vpop.f32.mrb[4].mxu1 }
 0x5a0   :  { %v885_v12 = vadd.f32 %v3079_v7, %v2610_v46  ;;  %v879_v19 = vpop.f32.mrb[5].mxu1 }
 0x5a1   :  { %v880_v9 = vadd.f32 %v2610_v46, %v879_v19 }
 0x5a2   :  { %v899_v21 = vadd.f32 %v885_v12, %v4079_v11  ;;  %v4593_v11 = vld [vmem:[%s4990_s7 + $0x8] sm:$0xff] }
 0x5a3   :  { %v898_v47 = vadd.f32 %v880_v9, %v4046_v5  ;;  %v4598_v5 = vld [vmem:[%s4990_s7 + $0x10] sm:$0xff] }
 0x5a5   :  { %v3495_v60 = vpack.c.bf16 %v899_v21, %v898_v47  ;;  %v1110_v47 = vld [vmem:[%s4989_s6 + $0x30] sm:$0xff] }
 0x5a6   :  { %v3082_v24 = vpop.f32.mrb[6].mxu1 }
 0x5a7   :  { %v895_v16 = vadd.f32 %v3082_v24, %v2610_v46  ;;  %v889_v38 = vpop.f32.mrb[7].mxu1  ;;  %3496 = vmatprep.subr.bf16.mxu0 %v3495_v60 }
 0x5a8   :  { %v890_v58 = vadd.f32 %v2610_v46, %v889_v38  ;;  %3498 = vmatpush3.bf16.msra.mxu0 %v3495_v60  ;;  %v1109_v46 = vld [vmem:[%s4989_s6 + $0x28] sm:$0xff]  ;;  %v1111_v60 = vld [vmem:[%s4989_s6 + $0x38] sm:$0xff] }
 0x5a9   :  { %v901_v37 = vadd.f32 %v895_v16, %v4107_v15  ;;  %v1104_v15 = vld [vmem:[%s4989_s6] sm:$0xff]  ;;  %v3519_v7 = vpack.c.bf16 %v1109_v46, %v1108_v25  ;;  %v3523_v24 = vpack.c.bf16 %v1111_v60, %v1110_v47 }
 0x5aa   :  { %v900_v23 = vadd.f32 %v890_v58, %v4091_v13  ;;  %v4607_v13 = vld [vmem:[%s4990_s7 + $0x18] sm:$0xff]  ;;  %v3511_v2 = vpack.c.bf16 %v1105_v54, %v1104_v15  ;;  %v2631_v60 = vld [vmem:[%s4984_s1 + $0x20] sm:$0xff] }
 0x5ac   :  { %v3499_v20 = vpack.c.bf16 %v901_v37, %v900_v23 }
 0x5ae   :  { %3500 = vmatprep.subr.bf16.mxu0 %v3499_v20 }
 0x5af   :  { %3502 = vmatpush3.bf16.msra.mxu0 %v3499_v20 }
 0x5b0   :  { %3512 = vmatprep.subr.bf16.mxu0 %v3511_v2 }
 0x5b2   :  { %3092 = vmatmul.mubr.msk.f32.vlgmr.msra.gmra.mrb[12].mxu0 %vm105_vm0, %v4593_v11 }
 0x5b3   :  { %3094 = vmatprep.mubr.msk.f32.mxu0 %vm105_vm0, %v4598_v5  ;;  %3514 = vmatpush3.bf16.msra.mxu0 %v3511_v2 }
 0x5b4   :  { %3516 = vmatprep.subr.bf16.mxu0 %v3515_v51 }
 0x5b6   :  { %3095 = vmatmul.mubr.msk.f32.gmra.mrb[14].mxu0 %vm105_vm0, %v4607_v13 }
 0x5b7   :  { %3518 = vmatpush3.bf16.msra.mxu0 %v3515_v51 }
 0x5b8   :  { %3520 = vmatprep.subr.bf16.mxu0 %v3519_v7 }
 0x5bb   :  { %3522 = vmatpush3.bf16.msra.mxu0 %v3519_v7 }
 0x5bc   :  { %3524 = vmatprep.subr.bf16.mxu0 %v3523_v24 }
 0x5bf   :  { %3526 = vmatpush3.bf16.msra.mxu0 %v3523_v24  ;;  %v2632_v24 = vld [vmem:[%s4984_s1 + $0x28] sm:$0xff] }
 0x685   :  { %v3093_v12 = vpop.f32.mrb[12].mxu0 }
 0x686   :  { %v980_v19 = vpop.f32.mrb[13].mxu0 }
 0x687   :  { %3105 = vmatprep.mubr.msk.f32.mxu1 %vm105_vm0, %v980_v19 }
 0x688   :  { %3106 = vmatmul.mubr.msk.f32.vlgmr.msra.gmra.mrb[8].mxu1 %vm105_vm0, %v3093_v12 }
 0x689   :  { %v3096_v9 = vpop.f32.mrb[14].mxu0 }
 0x68a   :  { %v990_v21 = vpop.f32.mrb[15].mxu0 }
 0x68b   :  { %3108 = vmatprep.mubr.msk.f32.mxu1 %vm105_vm0, %v990_v21 }
 0x68c   :  { %3109 = vmatmul.mubr.msk.f32.gmra.mrb[10].mxu1 %vm105_vm0, %v3096_v9 }
 0x68d   :  { %3141 = vmatprep.mubr.msk.f32.mxu1 %vm105_vm0, %v4567_v10 }
 0x75b   :  { %v3107_v16 = vpop.f32.mrb[8].mxu1 }
 0x75c   :  { %v1081_v38 = vpop.f32.mrb[9].mxu1  ;;  %v1101_v37 = vmax.f32 %v3107_v16, 0.0 }
 0x75d   :  { %v1100_v58 = vmax.f32 %v1081_v38, 0.0 }
 0x75f   :  { %v3110_v23 = vpop.f32.mrb[10].mxu1  ;;  %3127 = vmatprep.mubr.msk.f32.mxu0 %vm1112_vm2, %v1100_v58  ;;  %v3535_v58 = vpack.c.bf16 %v2632_v24, %v2631_v60 }
 0x760   :  { %v1091_v20 = vpop.f32.mrb[11].mxu1  ;;  %3128 = vmatmul.mubr.msk.f32.vlgmr.msra.gmra.mrb[16].mxu0 %vm1112_vm2, %v1101_v37  ;;  %v1103_v54 = vmax.f32 %v3110_v23, 0.0 }
 0x761   :  { %v1102_v15 = vmax.f32 %v1091_v20, 0.0 }
 0x763   :  { %3130 = vmatprep.mubr.msk.f32.mxu0 %vm1112_vm2, %v1102_v15 }
 0x764   :  { %3131 = vmatmul.mubr.msk.f32.gmra.mrb[18].mxu0 %vm1112_vm2, %v1103_v54 }
 0x833   :  { %v3129_v40 = vpop.f32.mrb[16].mxu0 }
 0x834   :  { %v1211_v2 = vadd.f32 %v3129_v40, %v3093_v12  ;;  %v1191_v48 = vpop.f32.mrb[17].mxu0  ;;  %v2633_v12 = vld [vmem:[%s4984_s1 + $0x30] sm:$0xff] }
 0x835   :  { %v1210_v51 = vadd.f32 %v1191_v48, %v980_v19  ;;  %v2634_v19 = vld [vmem:[%s4984_s1 + $0x38] sm:$0xff] }
 0x837   :  { %v3527_v25 = vpack.c.bf16 %v1211_v2, %v1210_v51  ;;  %v3132_v46 = vpop.f32.mrb[18].mxu0 }
 0x838   :  { %v1213_v7 = vadd.f32 %v3132_v46, %v3096_v9  ;;  %v1201_v47 = vpop.f32.mrb[19].mxu0  ;;  %v3539_v9 = vpack.c.bf16 %v2634_v19, %v2633_v12 }
 0x839   :  { %v1212_v16 = vadd.f32 %v1201_v47, %v990_v21  ;;  %3528 = vmatprep.subr.bf16.mxu1 %v3527_v25 }
 0x83a   :  { %3530 = vmatpush3.bf16.msra.mxu1 %v3527_v25 }
 0x83b   :  { %v3531_v38 = vpack.c.bf16 %v1213_v7, %v1212_v16 }
 0x83d   :  { %3532 = vmatprep.subr.bf16.mxu1 %v3531_v38 }
 0x83e   :  { %3534 = vmatpush3.bf16.msra.mxu1 %v3531_v38 }
 0x83f   :  { %3536 = vmatprep.subr.bf16.mxu1 %v3535_v58 }
 0x841   :  { %3142 = vmatmul.mubr.msk.f32.vlgmr.msra.gmra.mrb[12].mxu1 %vm105_vm0, %v4593_v11 }
 0x842   :  { %3144 = vmatprep.mubr.msk.f32.mxu1 %vm105_vm0, %v4598_v5  ;;  %3538 = vmatpush3.bf16.msra.mxu1 %v3535_v58 }
 0x843   :  { %3540 = vmatprep.subr.bf16.mxu1 %v3539_v9 }
 0x845   :  { %3145 = vmatmul.mubr.msk.f32.gmra.mrb[14].mxu1 %vm105_vm0, %v4607_v13 }
 0x846   :  { %3542 = vmatpush3.bf16.msra.mxu1 %v3539_v9 }
 0x847   :  { %3592 = vmatprep.subr.bf16.mxu1 %v4321_v62 }
 0x914   :  { %v4664_v21 = vpop.f32.mrb[12].mxu1 }
 0x915   :  { %v4666_v37 = vpop.f32.mrb[13].mxu1 }
 0x916   :  { %3155 = vmatprep.mubr.msk.f32.mxu1 %vm105_vm0, %v4666_v37 }
 0x917   :  { %3156 = vmatmul.mubr.msk.f32.vlgmr.msra.gmra.mrb[16].mxu1 %vm105_vm0, %v4664_v21 }
 0x918   :  { %v4672_v23 = vpop.f32.mrb[14].mxu1  ;;  %3594 = vmatpush3.bf16.msra.mxu1 %v4321_v62  ;;  %v2636_v62 = vld [vmem:[%s4985_s2 + $0x1] ss:$0 sm:$0xff] }
 0x919   :  { %v4675_v20 = vpop.f32.mrb[15].mxu1  ;;  %3596 = vmatprep.subr.bf16.mxu1 %v4326_v0 }
 0x91a   :  { %3158 = vmatprep.mubr.msk.f32.mxu1 %vm105_vm0, %v4675_v20 }
 0x91b   :  { %3159 = vmatmul.mubr.msk.f32.gmra.mrb[18].mxu1 %vm105_vm0, %v4672_v23 }
 0x91c   :  { %3598 = vmatpush3.bf16.msra.mxu1 %v4326_v0 }
 0x91d   :  { %3600 = vmatprep.subr.bf16.mxu1 %v4337_v3 }
 0x920   :  { %3602 = vmatpush3.bf16.msra.mxu1 %v4337_v3 }
 0x921   :  { %3604 = vmatprep.subr.bf16.mxu1 %v4347_v39 }
 0x924   :  { %3606 = vmatpush3.bf16.msra.mxu1 %v4347_v39 }
 0x925   :  { %3608 = vmatprep.subr.bf16.mxu1 %v4382_v63 }
 0x928   :  { %3610 = vmatpush3.bf16.msra.mxu1 %v4382_v63 }
 0x929   :  { %3612 = vmatprep.subr.bf16.mxu1 %v4394_v35 }
 0x92c   :  { %3614 = vmatpush3.bf16.msra.mxu1 %v4394_v35 }
 0x92d   :  { %3616 = vmatprep.subr.bf16.mxu1 %v4406_v44 }
 0x930   :  { %3618 = vmatpush3.bf16.msra.mxu1 %v4406_v44 }
 0x931   :  { %3620 = vmatprep.subr.bf16.mxu1 %v4418_v53 }
 0x934   :  { %3622 = vmatpush3.bf16.msra.mxu1 %v4418_v53 }
 0x9ea   :  { %v3157_v0 = vpop.f32.mrb[16].mxu1 }
 0x9eb   :  { %v4698_v3 = vadd.f32 %v3157_v0, %v2636_v62  ;;  %v1390_v39 = vpop.f32.mrb[17].mxu1 }
 0x9ec   :  { %v4700_v63 = vadd.f32 %v2636_v62, %v1390_v39 }
 0x9ed   :  { %v1410_v35 = vmul.f32 %v4698_v3, %v4189_v29  ;;  %v1414_v51 = vmul.f32 %v4698_v3, %v4191_v30  ;;  %v1418_v46 = vmul.f32 %v4698_v3, %v4199_v34 }
 0x9ee   :  { %v3160_v15 = vpop.f32.mrb[18].mxu1  ;;  %3193 = vmatprep.mubr.msk.f32.mxu0 %vm105_vm0, %v4700_v63  ;;  %v1409_v44 = vmul.f32 %v4700_v63, %v4185_v27  ;;  %v1413_v48 = vmul.f32 %v4700_v63, %v4193_v31  ;;  %v1417_v25 = vmul.f32 %v4700_v63, %v4204_v36 }
 0x9ef   :  { %v4708_v53 = vadd.f32 %v3160_v15, %v2636_v62  ;;  %v1400_v54 = vpop.f32.mrb[19].mxu1 }
 0x9f0   :  { %v4710_v40 = vadd.f32 %v2636_v62, %v1400_v54  ;;  %v3801_v2 = vpack.i.bf16 %v1410_v35, %v1409_v44  ;;  %v3811_v47 = vpack.i.bf16 %v1414_v51, %v1413_v48  ;;  %v3821_v34 = vpack.i.bf16 %v1418_v46, %v1417_v25 }
 0x9f1   :  { %v1412_v29 = vmul.f32 %v4708_v53, %v4187_v28  ;;  %v1416_v30 = vmul.f32 %v4708_v53, %v4195_v32  ;;  %v1422_v28 = vmul.f32 %v4698_v3, %v4237_v56  ;;  %v1424_v56 = vmul.f32 %v4708_v53, %v4255_v4 }
 0x9f2   :  { %3802 = vrot.lane.b32.xlu0 %v3801_v2, %s3946_s22  ;;  %v1411_v27 = vmul.f32 %v4710_v40, %v4183_v26  ;;  %v1415_v31 = vmul.f32 %v4710_v40, %v4197_v33  ;;  %v1421_v26 = vmul.f32 %v4700_v63, %v4243_v61  ;;  %v1419_v60 = vmul.f32 %v4710_v40, %v4218_v45 }
 0x9f3   :  { %v1420_v33 = vmul.f32 %v4708_v53, %v4212_v42  ;;  %v1423_v61 = vmul.f32 %v4710_v40, %v4257_v6 }
 0x9f4   :  { %v3806_v7 = vpack.i.bf16 %v1412_v29, %v1411_v27  ;;  %v3816_v36 = vpack.i.bf16 %v1416_v30, %v1415_v31  ;;  %v3831_v24 = vpack.i.bf16 %v1422_v28, %v1421_v26 }
 0x9f5   :  { %v3826_v32 = vpack.i.bf16 %v1420_v33, %v1419_v60  ;;  %v3836_v45 = vpack.i.bf16 %v1424_v56, %v1423_v61 }
 0x9f6   :  { %3807 = vrot.lane.b32.xlu1 %v3806_v7, %s3946_s22  ;;  %3812 = vrot.lane.b32.xlu0 %v3811_v47, %s3946_s22 }
 0x9fa   :  { %3817 = vrot.lane.b32.xlu1 %v3816_v36, %s3946_s22  ;;  %3822 = vrot.lane.b32.xlu0 %v3821_v34, %s3946_s22 }
 0x9fe   :  { %3827 = vrot.lane.b32.xlu1 %v3826_v32, %s3946_s22  ;;  %3832 = vrot.lane.b32.xlu0 %v3831_v24, %s3946_s22 }
 0xa02   :  { %3837 = vrot.lane.b32.xlu1 %v3836_v45, %s3946_s22  ;;  %s3948_s22 = smov [#allocation2]  }
 0xa64   :  { %v3803_v42 = vpop.permute.xlu0 %3802 }
 0xa65   :  { %v3805_v16 = vunpack.i.h.bf16 %v3803_v42  ;;  %v3804_v38 = vunpack.i.l.bf16 %v3803_v42 }
 0xa67   :  { %v3543_v58 = vpack.c.bf16 %v3805_v16, %v3804_v38  ;;  %v1425_v16 = vmul.f32 %v4700_v63, %v4448_v18  ;;  %v1426_v38 = vmul.f32 %v4698_v3, %v4458_v59  ;;  %v1435_v59 = vmul.f32 %v4710_v40, %v4508_v1 }
 0xa68   :  { %v3808_v12 = vpop.permute.xlu1 %3807  ;;  %v3813_v6 = vpop.permute.xlu0 %3812 }
 0xa69   :  { %v3810_v19 = vunpack.i.h.bf16 %v3808_v12  ;;  %v3809_v9 = vunpack.i.l.bf16 %v3808_v12  ;;  %3545 = vmatprep.subr.msk.bf16.mxu0 %vm4270_vm1, %v3543_v58  ;;  %v3815_v62 = vunpack.i.h.bf16 %v3813_v6  ;;  %v3814_v0 = vunpack.i.l.bf16 %v3813_v6  ;;  %v5016_v6 = vld [vmem:[#allocation11_spill] sm:$0xff] }
 0xa6a   :  { %3548 = vmatpush3.bf16.xpose.msk.msra.mxu0 %vm4270_vm1, %v3543_v58  ;;  %v1430_v58 = vmul.f32 %v4698_v3, %v4466_v8  ;;  %v1432_v12 = vmul.f32 %v4708_v53, %v4482_v14  ;;  %v1427_v8 = vmul.f32 %v4710_v40, %v4450_v22  ;;  %v1439_v14 = vmul.f32 %v4710_v40, %v5016_v6 }
 0xa6b   :  { %v3549_v4 = vpack.c.bf16 %v3810_v19, %v3809_v9  ;;  %v3555_v39 = vpack.c.bf16 %v3815_v62, %v3814_v0  ;;  %v5015_v19 = vld [vmem:[#allocation5_spill] sm:$0xff]  ;;  %v5018_v0 = vld [vmem:[#allocation7_spill] sm:$0xff] }
 0xa6c   :  { %v3818_v35 = vpop.permute.xlu1 %3817  ;;  %v3823_v2 = vpop.permute.xlu0 %3822 }
 0xa6d   :  { %3551 = vmatprep.subr.msk.bf16.mxu0 %vm4270_vm1, %v3549_v4  ;;  %v3820_v15 = vunpack.i.h.bf16 %v3818_v35  ;;  %v3819_v44 = vunpack.i.l.bf16 %v3818_v35  ;;  %v3825_v48 = vunpack.i.h.bf16 %v3823_v2  ;;  %v3824_v51 = vunpack.i.l.bf16 %v3823_v2 }
 0xa6f   :  { %v3561_v54 = vpack.c.bf16 %v3820_v15, %v3819_v44  ;;  %v3567_v29 = vpack.c.bf16 %v3825_v48, %v3824_v51  ;;  %v5020_v44 = vld [vmem:[#allocation9_spill] sm:$0xff] }
 0xa70   :  { %v3828_v27 = vpop.permute.xlu1 %3827  ;;  %v3833_v47 = vpop.permute.xlu0 %3832 }
 0xa71   :  { %v3830_v25 = vunpack.i.h.bf16 %v3828_v27  ;;  %v3829_v46 = vunpack.i.l.bf16 %v3828_v27  ;;  %v3835_v31 = vunpack.i.h.bf16 %v3833_v47  ;;  %v3834_v30 = vunpack.i.l.bf16 %v3833_v47 }
 0xa72   :  { %3554 = vmatpush3.bf16.xpose.msk.msra.mxu0 %vm4270_vm1, %v3549_v4  ;;  %v5017_v4 = vld [vmem:[#allocation10_spill] sm:$0xff] }
 0xa73   :  { %3557 = vmatprep.subr.msk.bf16.mxu0 %vm4270_vm1, %v3555_v39  ;;  %v3573_v7 = vpack.c.bf16 %v3830_v25, %v3829_v46  ;;  %v3579_v26 = vpack.c.bf16 %v3835_v31, %v3834_v30  ;;  %v1440_v62 = vmul.f32 %v4708_v53, %v5017_v4 }
 0xa74   :  { %v3838_v28 = vpop.permute.xlu1 %3837 }
 0xa75   :  { %v3840_v36 = vunpack.i.h.bf16 %v3838_v28  ;;  %v3839_v34 = vunpack.i.l.bf16 %v3838_v28  ;;  %v3876_v22 = vpack.i.bf16 %v1440_v62, %v1439_v14 }
 0xa77   :  { %v3585_v60 = vpack.c.bf16 %v3840_v36, %v3839_v34 }
 0xa7a   :  { %3560 = vmatpush3.bf16.xpose.msk.msra.mxu0 %vm4270_vm1, %v3555_v39  ;;  %v5019_v39 = vld [vmem:[#allocation6_spill] sm:$0xff] }
 0xa7b   :  { %3563 = vmatprep.subr.msk.bf16.mxu0 %vm4270_vm1, %v3561_v54  ;;  %v1434_v35 = vmul.f32 %v4698_v3, %v5019_v39 }
 0xa82   :  { %3566 = vmatpush3.bf16.xpose.msk.msra.mxu0 %vm4270_vm1, %v3561_v54  ;;  %v5021_v54 = vld [vmem:[#allocation8_spill] sm:$0xff] }
 0xa83   :  { %3569 = vmatprep.subr.msk.bf16.mxu0 %vm4270_vm1, %v3567_v29 }
 0xa8a   :  { %3572 = vmatpush3.bf16.xpose.msk.msra.mxu0 %vm4270_vm1, %v3567_v29 }
 0xa8b   :  { %3575 = vmatprep.subr.msk.bf16.mxu0 %vm4270_vm1, %v3573_v7 }
 0xa92   :  { %3578 = vmatpush3.bf16.xpose.msk.msra.mxu0 %vm4270_vm1, %v3573_v7 }
 0xa93   :  { %3581 = vmatprep.subr.msk.bf16.mxu0 %vm4270_vm1, %v3579_v26 }
 0xa9a   :  { %3584 = vmatpush3.bf16.xpose.msk.msra.mxu0 %vm4270_vm1, %v3579_v26 }
 0xa9b   :  { %3587 = vmatprep.subr.msk.bf16.mxu0 %vm4270_vm1, %v3585_v60 }
 0xaa2   :  { %3590 = vmatpush3.bf16.xpose.msk.msra.mxu0 %vm4270_vm1, %v3585_v60 }
 0xaa9   :  { %3194 = vmatmul.mubr.msk.f32.vlgmr.msra.gmra.mrb[20].mxu0 %vm105_vm0, %v4698_v3 }
 0xaaa   :  { %3196 = vmatprep.mubr.msk.f32.mxu0 %vm105_vm0, %v4710_v40 }
 0xaad   :  { %3197 = vmatmul.mubr.msk.f32.gmra.mrb[22].mxu0 %vm105_vm0, %v4708_v53 }
 0xb7c   :  { %v3195_v33 = vpop.f32.mrb[20].mxu0 }
 0xb7d   :  { %v1605_v32 = vadd.f32 %v3195_v33, %v4355_v41  ;;  %v1599_v24 = vpop.f32.mrb[21].mxu0  ;;  %v3841_v41 = vpack.i.bf16 %v1426_v38, %v1425_v16 }
 0xb7e   :  { %v1600_v61 = vadd.f32 %v1599_v24, %v4360_v43  ;;  %v1429_v43 = vmul.f32 %v4700_v63, %v4474_v49  ;;  %v1436_v49 = vmul.f32 %v4708_v53, %v4504_v55  ;;  %v1433_v55 = vmul.f32 %v4700_v63, %v5018_v0 }
 0xb7f   :  { %1620 = vmax.xlane.f32.xlu1 %v1605_v32 }
 0xb80   :  { %v3198_v56 = vpop.f32.mrb[22].mxu0  ;;  %1618 = vmax.xlane.f32.xlu0 %v1600_v61  ;;  %v3866_v9 = vpack.i.bf16 %v1436_v49, %v1435_v59  ;;  %v3861_v15 = vpack.i.bf16 %v1434_v35, %v1433_v55  ;;  %v2665_v35 = vld [vmem:[%s4986_s3 + $0x20] sm:$0xff] }
 0xb81   :  { %v1609_v50 = vpop.f32.mrb[23].mxu0  ;;  %v1615_v42 = vadd.f32 %v3198_v56, %v4373_v57  ;;  %v1431_v57 = vmul.f32 %v4710_v40, %v4487_v17  ;;  %v1428_v17 = vmul.f32 %v4708_v53, %v5015_v19  ;;  %v1437_v40 = vmul.f32 %v4700_v63, %v5020_v44 }
 0xb82   :  { %v1610_v45 = vadd.f32 %v1609_v50, %v4367_v52  ;;  %v3851_v52 = vpack.i.bf16 %v1430_v58, %v1429_v43  ;;  %v1438_v53 = vmul.f32 %v4698_v3, %v5021_v54 }
 0xb83   :  { %v3856_v18 = vpack.i.bf16 %v1432_v12, %v1431_v57  ;;  %v3846_v1 = vpack.i.bf16 %v1428_v17, %v1427_v8 }
 0xb84   :  { %1622 = vmax.xlane.f32.xlu0 %v1610_v45  ;;  %v3871_v2 = vpack.i.bf16 %v1438_v53, %v1437_v40  ;;  %v2668_v40 = vld [vmem:[%s4986_s3 + $0x38] sm:$0xff] }
 0xb88   :  { %1624 = vmax.xlane.f32.xlu0 %v1615_v42 }
 0xb90   :  { %3842 = vrot.lane.b32.xlu1 %v3841_v41, %s3947_s21 }
 0xb94   :  { %3852 = vrot.lane.b32.xlu1 %v3851_v52, %s3947_s21 }
 0xb98   :  { %3857 = vrot.lane.b32.xlu1 %v3856_v18, %s3947_s21 }
 0xb9c   :  { %3867 = vrot.lane.b32.xlu1 %v3866_v9, %s3947_s21 }
 0xb9e   :  { %3847 = vrot.lane.b32.xlu0 %v3846_v1, %s3947_s21 }
 0xba0   :  { %3877 = vrot.lane.b32.xlu1 %v3876_v22, %s3947_s21  ;;  %v2666_v22 = vld [vmem:[%s4986_s3 + $0x28] sm:$0xff] }
 0xba1   :  { %v3655_v44 = vpack.c.bf16 %v2666_v22, %v2665_v35 }
 0xba2   :  { %3862 = vrot.lane.b32.xlu0 %v3861_v15, %s3947_s21  ;;  %v2667_v15 = vld [vmem:[%s4986_s3 + $0x30] sm:$0xff] }
 0xba3   :  { %v3659_v54 = vpack.c.bf16 %v2668_v40, %v2667_v15  ;;  %3656 = vmatprep.subr.bf16.mxu0 %v3655_v44 }
 0xba4   :  { %3658 = vmatpush3.bf16.msra.mxu0 %v3655_v44 }
 0xba5   :  { %3660 = vmatprep.subr.bf16.mxu0 %v3659_v54 }
 0xba6   :  { %3872 = vrot.lane.b32.xlu0 %v3871_v2, %s3947_s21 }
 0xba8   :  { %3662 = vmatpush3.bf16.msra.mxu0 %v3659_v54 }
 0xc0c   :  { %v1621_v48 = vpop.xlane.xlu1 %1620 }
 0xc0d   :  { %v1627_v51 = vsub.f32 %v1605_v32, %v1621_v48  ;;  %v1619_v29 = vpop.xlane.xlu0 %1618 }
 0xc0e   :  { %v1626_v27 = vsub.f32 %v1600_v61, %v1619_v29 }
 0xc0f   :  { %v1632_v25 = vmul.f32 1.442695, %v1627_v51 }
 0xc10   :  { %v1630_v46 = vmul.f32 1.442695, %v1626_v27  ;;  %v3843_v7 = vpop.permute.xlu1 %3842 }
 0xc11   :  { %v3845_v47 = vunpack.i.h.bf16 %v3843_v7  ;;  %v3844_v31 = vunpack.i.l.bf16 %v3843_v7  ;;  %v1623_v30 = vpop.xlane.xlu0 %1622 }
 0xc12   :  { %3897 = vpow2.f32 %v1630_v46  ;;  %v1628_v63 = vsub.f32 %v1610_v45, %v1623_v30 }
 0xc13   :  { %3899 = vpow2.f32 %v1632_v25  ;;  %v3623_v26 = vpack.c.bf16 %v3845_v47, %v3844_v31 }
 0xc14   :  { %v1634_v3 = vmul.f32 1.442695, %v1628_v63  ;;  %v3853_v60 = vpop.permute.xlu1 %3852 }
 0xc15   :  { %3624 = vmatprep.subr.bf16.mxu1 %v3623_v26  ;;  %v1625_v28 = vpop.xlane.xlu0 %1624  ;;  %v3855_v45 = vunpack.i.h.bf16 %v3853_v60  ;;  %v3854_v16 = vunpack.i.l.bf16 %v3853_v60  ;;  %v2681_v60 = vld [vmem:[%s4988_s5 + $0x30] sm:$0xff] }
 0xc16   :  { %3901 = vpow2.f32 %v1634_v3  ;;  %v1629_v36 = vsub.f32 %v1615_v42, %v1625_v28 }
 0xc17   :  { %v3631_v41 = vpack.c.bf16 %v3855_v45, %v3854_v16 }
 0xc18   :  { %v1636_v34 = vmul.f32 1.442695, %v1629_v36  ;;  %v3858_v38 = vpop.permute.xlu1 %3857  ;;  %v2679_v36 = vld [vmem:[%s4988_s5 + $0x20] sm:$0xff] }
 0xc19   :  { %v3848_v33 = vpop.permute.xlu0 %3847  ;;  %v3860_v43 = vunpack.i.h.bf16 %v3858_v38  ;;  %v3859_v58 = vunpack.i.l.bf16 %v3858_v38 }
 0xc1a   :  { %3903 = vpow2.f32 %v1636_v34  ;;  %v3850_v32 = vunpack.i.h.bf16 %v3848_v33  ;;  %v3849_v24 = vunpack.i.l.bf16 %v3848_v33  ;;  %v2680_v34 = vld [vmem:[%s4988_s5 + $0x28] sm:$0xff] }
 0xc1b   :  { %v3635_v12 = vpack.c.bf16 %v3860_v43, %v3859_v58  ;;  %v3671_v33 = vpack.c.bf16 %v2680_v34, %v2679_v36 }
 0xc1c   :  { %v4830_v61 = vpop.eup %3897  ;;  %v3627_v56 = vpack.c.bf16 %v3850_v32, %v3849_v24  ;;  %v3868_v49 = vpop.permute.xlu1 %3867  ;;  %v2682_v32 = vld [vmem:[%s4988_s5 + $0x38] sm:$0xff] }
 0xc1d   :  { %v4832_v50 = vpop.eup %3899  ;;  %3231 = vmatprep.mubr.f32.mxu1 %v4830_v61  ;;  %v3863_v52 = vpop.permute.xlu0 %3862  ;;  %v3870_v8 = vunpack.i.h.bf16 %v3868_v49  ;;  %v3869_v19 = vunpack.i.l.bf16 %v3868_v49  ;;  %v3675_v24 = vpack.c.bf16 %v2682_v32, %v2681_v60  ;;  %3672 = vmatprep.subr.bf16.mxu0 %v3671_v33  ;;  %v2690_v49 = vld [vmem:[%s4989_s6 + $0x58] sm:$0xff] }
 0xc1e   :  { %3232 = vmatmul.mubr.f32.vlgmr.msra.gmra.mrb[20].mxu1 %v4832_v50  ;;  %v3865_v18 = vunpack.i.h.bf16 %v3863_v52  ;;  %v3864_v59 = vunpack.i.l.bf16 %v3863_v52 }
 0xc1f   :  { %3626 = vmatpush3.bf16.msra.mxu1 %v3623_v26  ;;  %v3643_v6 = vpack.c.bf16 %v3870_v8, %v3869_v19  ;;  %v2691_v19 = vld [vmem:[%s4989_s6 + $0x60] sm:$0xff] }
 0xc20   :  { %v4836_v42 = vpop.eup %3901  ;;  %3628 = vmatprep.subr.bf16.mxu1 %v3627_v56  ;;  %v3639_v17 = vpack.c.bf16 %v3865_v18, %v3864_v59  ;;  %v3878_v62 = vpop.permute.xlu1 %3877 }
 0xc21   :  { %3234 = vmatprep.mubr.f32.mxu1 %v4836_v42  ;;  %v3873_v9 = vpop.permute.xlu0 %3872  ;;  %v3880_v1 = vunpack.i.h.bf16 %v3878_v62  ;;  %v3879_v0 = vunpack.i.l.bf16 %v3878_v62 }
 0xc22   :  { %v3875_v14 = vunpack.i.h.bf16 %v3873_v9  ;;  %v3874_v4 = vunpack.i.l.bf16 %v3873_v9 }
 0xc23   :  { %3630 = vmatpush3.bf16.msra.mxu1 %v3627_v56  ;;  %v3651_v39 = vpack.c.bf16 %v3880_v1, %v3879_v0  ;;  %v2693_v1 = vld [vmem:[%s4989_s6 + $0x70] sm:$0xff]  ;;  %v2694_v0 = vld [vmem:[%s4989_s6 + $0x78] sm:$0xff] }
 0xc24   :  { %v3904_v57 = vpop.eup %3903  ;;  %3632 = vmatprep.subr.bf16.mxu1 %v3631_v41  ;;  %v3647_v55 = vpack.c.bf16 %v3875_v14, %v3874_v4 }
 0xc25   :  { %3235 = vmatmul.mubr.f32.gmra.mrb[22].mxu1 %v3904_v57 }
 0xc27   :  { %3634 = vmatpush3.bf16.msra.mxu1 %v3631_v41 }
 0xc28   :  { %3636 = vmatprep.subr.bf16.mxu1 %v3635_v12 }
 0xc2b   :  { %3638 = vmatpush3.bf16.msra.mxu1 %v3635_v12 }
 0xc2c   :  { %3640 = vmatprep.subr.bf16.mxu1 %v3639_v17 }
 0xc2f   :  { %3642 = vmatpush3.bf16.msra.mxu1 %v3639_v17  ;;  %v2692_v17 = vld [vmem:[%s4989_s6 + $0x68] sm:$0xff] }
 0xc30   :  { %3644 = vmatprep.subr.bf16.mxu1 %v3643_v6  ;;  %v3687_v9 = vpack.c.bf16 %v2692_v17, %v2691_v19 }
 0xc33   :  { %3646 = vmatpush3.bf16.msra.mxu1 %v3643_v6 }
 0xc34   :  { %3648 = vmatprep.subr.bf16.mxu1 %v3647_v55 }
 0xc37   :  { %3650 = vmatpush3.bf16.msra.mxu1 %v3647_v55  ;;  %v3691_v55 = vpack.c.bf16 %v2694_v0, %v2693_v1  ;;  %v2703_v1 = vld [vmem:[%s4995_s12] ss:$0 sm:$0xff] }
 0xc38   :  { %3652 = vmatprep.subr.bf16.mxu1 %v3651_v39 }
 0xc3b   :  { %3654 = vmatpush3.bf16.msra.mxu1 %v3651_v39 }
 0xcf1   :  { %v3233_v53 = vpop.f32.mrb[20].mxu1 }
 0xcf2   :  { %3905 = vrcp.f32 %v3233_v53  ;;  %v1704_v2 = vpop.f32.mrb[21].mxu1 }
 0xcf3   :  { %3907 = vrcp.f32 %v1704_v2 }
 0xcf8   :  { %v3236_v48 = vpop.f32.mrb[22].mxu1 }
 0xcf9   :  { %3909 = vrcp.f32 %v3236_v48  ;;  %v1714_v51 = vpop.f32.mrb[23].mxu1 }
 0xcfa   :  { %3911 = vrcp.f32 %v1714_v51 }
 0xcfc   :  { %v3906_v29 = vpop.eup %3905 }
 0xcfd   :  { %v3908_v27 = vpop.eup %3907  ;;  %v1728_v25 = vmul.f32 %v3906_v29, %v4832_v50 }
 0xcfe   :  { %v1727_v46 = vmul.f32 %v3908_v27, %v4830_v61  ;;  %v2670_v61 = vld [vmem:[%s4987_s4 + $0x1] ss:$0 sm:$0xff]  ;;  %s2570_s4 = sshll.u32 %s3948_s22, 4  ;;  %s2571_s4 = int_to_ptr.vmem [resolvable:$true] %s2570_s4 }
 0xcff   :  { %2662 = vst [vmem:[%s4998_s15 + $0x28] sm:$0xff] %v1728_v25  ;;  %p3926_p1 = scmp.lt.s32.totalorder %s2571_s4, %s2571_s4 }
 0xd00   :  { %2661 = vst [vmem:[%s4998_s15 + $0x20] sm:$0xff] %v1727_v46  ;;  %3269 = vmatprep.mubr.f32.mxu1 %v1727_v46 }
 0xd01   :  { %3270 = vmatmul.mubr.f32.vlgmr.msra.gmra.mrb[24].mxu1 %v1728_v25 }
 0xd03   :  { %v3910_v7 = vpop.eup %3909 }
 0xd04   :  { %v3912_v47 = vpop.eup %3911  ;;  %v1730_v31 = vmul.f32 %v3910_v7, %v3904_v57 }
 0xd05   :  { %v1729_v30 = vmul.f32 %v3912_v47, %v4836_v42 }
 0xd06   :  { %2664 = vst [vmem:[%s4998_s15 + $0x38] sm:$0xff] %v1730_v31 }
 0xd07   :  { %2663 = vst [vmem:[%s4998_s15 + $0x30] sm:$0xff] %v1729_v30  ;;  %3272 = vmatprep.mubr.f32.mxu1 %v1729_v30 }
 0xd08   :  { %3273 = vmatmul.mubr.f32.gmra.mrb[26].mxu1 %v1730_v31 }
 0xd09   :  { %3297 = vmatprep.mubr.msk.f32.mxu1 %vm105_vm0, %v4567_v10 }
 0xdd4   :  { %v3271_v63 = vpop.f32.mrb[24].mxu1 }
 0xdd5   :  { %v1866_v26 = vpop.f32.mrb[25].mxu1 }
 0xdd6   :  { %3283 = vmatprep.mubr.msk.f32.mxu0 %vm105_vm0, %v1866_v26 }
 0xdd7   :  { %3284 = vmatmul.mubr.msk.f32.vlgmr.msra.gmra.mrb[24].mxu0 %vm105_vm0, %v3271_v63 }
 0xdd8   :  { %3674 = vmatpush3.bf16.msra.mxu0 %v3671_v33 }
 0xdd9   :  { %3676 = vmatprep.subr.bf16.mxu0 %v3675_v24 }
 0xddb   :  { %v3274_v3 = vpop.f32.mrb[26].mxu1 }
 0xddc   :  { %v1876_v28 = vpop.f32.mrb[27].mxu1  ;;  %3678 = vmatpush3.bf16.msra.mxu0 %v3675_v24 }
 0xddd   :  { %3286 = vmatprep.mubr.msk.f32.mxu0 %vm105_vm0, %v1876_v28 }
 0xdde   :  { %3287 = vmatmul.mubr.msk.f32.gmra.mrb[26].mxu0 %vm105_vm0, %v3274_v3 }
 0xeaa   :  { %v3285_v56 = vpop.f32.mrb[24].mxu0 }
 0xeab   :  { %v1982_v50 = vadd.f32 %v3285_v56, %v2670_v61  ;;  %v1976_v45 = vpop.f32.mrb[25].mxu0 }
 0xeac   :  { %v1977_v16 = vadd.f32 %v2670_v61, %v1976_v45 }
 0xead   :  { %v1996_v38 = vadd.f32 %v4664_v21, %v1982_v50  ;;  %v2687_v21 = vld [vmem:[%s4989_s6 + $0x40] sm:$0xff] }
 0xeae   :  { %v1995_v42 = vadd.f32 %v1977_v16, %v4666_v37  ;;  %v2688_v37 = vld [vmem:[%s4989_s6 + $0x48] sm:$0xff] }
 0xeb0   :  { %v3663_v41 = vpack.c.bf16 %v1996_v38, %v1995_v42 }
 0xeb1   :  { %v3288_v43 = vpop.f32.mrb[26].mxu0 }
 0xeb2   :  { %v1992_v58 = vadd.f32 %v3288_v43, %v2670_v61  ;;  %v1986_v52 = vpop.f32.mrb[27].mxu0  ;;  %3664 = vmatprep.subr.bf16.mxu1 %v3663_v41 }
 0xeb3   :  { %v1987_v57 = vadd.f32 %v2670_v61, %v1986_v52  ;;  %3666 = vmatpush3.bf16.msra.mxu1 %v3663_v41 }
 0xeb4   :  { %v1998_v12 = vadd.f32 %v4672_v23, %v1992_v58  ;;  %v2689_v23 = vld [vmem:[%s4989_s6 + $0x50] sm:$0xff] }
 0xeb5   :  { %v1997_v18 = vadd.f32 %v1987_v57, %v4675_v20  ;;  %v3679_v20 = vpack.c.bf16 %v2688_v37, %v2687_v21  ;;  %v3683_v8 = vpack.c.bf16 %v2690_v49, %v2689_v23 }
 0xeb7   :  { %v3667_v59 = vpack.c.bf16 %v1998_v12, %v1997_v18  ;;  %v2460_v18 = vld [vmem:[%s4991_s8] sm:$0xff] }
 0xeb9   :  { %3668 = vmatprep.subr.bf16.mxu1 %v3667_v59 }
 0xeba   :  { %3670 = vmatpush3.bf16.msra.mxu1 %v3667_v59  ;;  %v2462_v59 = vld [vmem:[%s4991_s8 + $0x10] sm:$0xff] }
 0xebb   :  { %3680 = vmatprep.subr.bf16.mxu1 %v3679_v20 }
 0xebd   :  { %3298 = vmatmul.mubr.msk.f32.vlgmr.msra.gmra.mrb[28].mxu1 %vm105_vm0, %v4593_v11 }
 0xebe   :  { %3300 = vmatprep.mubr.msk.f32.mxu1 %vm105_vm0, %v4598_v5  ;;  %3682 = vmatpush3.bf16.msra.mxu1 %v3679_v20 }
 0xebf   :  { %3684 = vmatprep.subr.bf16.mxu1 %v3683_v8 }
 0xec1   :  { %3301 = vmatmul.mubr.msk.f32.gmra.mrb[30].mxu1 %vm105_vm0, %v4607_v13 }
 0xec2   :  { %3686 = vmatpush3.bf16.msra.mxu1 %v3683_v8 }
 0xec3   :  { %3688 = vmatprep.subr.bf16.mxu1 %v3687_v9 }
 0xec6   :  { %3690 = vmatpush3.bf16.msra.mxu1 %v3687_v9 }
 0xec7   :  { %3692 = vmatprep.subr.bf16.mxu1 %v3691_v55 }
 0xeca   :  { %3694 = vmatpush3.bf16.msra.mxu1 %v3691_v55 }
 0xf90   :  { %v3299_v6 = vpop.f32.mrb[28].mxu1 }
 0xf91   :  { %v2065_v14 = vpop.f32.mrb[29].mxu1 }
 0xf92   :  { %3311 = vmatprep.mubr.msk.f32.mxu0 %vm105_vm0, %v2065_v14 }
 0xf93   :  { %3312 = vmatmul.mubr.msk.f32.vlgmr.msra.gmra.mrb[28].mxu0 %vm105_vm0, %v3299_v6 }
 0xf94   :  { %v3302_v4 = vpop.f32.mrb[30].mxu1 }
 0xf95   :  { %v2075_v62 = vpop.f32.mrb[31].mxu1 }
 0xf96   :  { %3314 = vmatprep.mubr.msk.f32.mxu0 %vm105_vm0, %v2075_v62 }
 0xf97   :  { %3315 = vmatmul.mubr.msk.f32.gmra.mrb[30].mxu0 %vm105_vm0, %v3302_v4 }
 0xf98   :  { %3347 = vmatprep.mubr.msk.f32.mxu0 %vm105_vm0, %v4567_v10 }
0x1066   :  { %v3313_v39 = vpop.f32.mrb[28].mxu0 }
0x1067   :  { %v2167_v35 = vpop.f32.mrb[29].mxu0  ;;  %v2187_v15 = vmax.f32 %v3313_v39, 0.0 }
0x1068   :  { %v2186_v22 = vmax.f32 %v2167_v35, 0.0  ;;  %v2704_v35 = vld [vmem:[%s4996_s13] ss:$0 sm:$0xff] }
0x106a   :  { %v3316_v44 = vpop.f32.mrb[30].mxu0  ;;  %3333 = vmatprep.mubr.msk.f32.mxu1 %vm1112_vm2, %v2186_v22 }
0x106b   :  { %v2177_v40 = vpop.f32.mrb[31].mxu0  ;;  %3334 = vmatmul.mubr.msk.f32.vlgmr.msra.gmra.mrb[32].mxu1 %vm1112_vm2, %v2187_v15  ;;  %v2189_v54 = vmax.f32 %v3316_v44, 0.0 }
0x106c   :  { %v2188_v10 = vmax.f32 %v2177_v40, 0.0 }
0x106e   :  { %3336 = vmatprep.mubr.msk.f32.mxu1 %vm1112_vm2, %v2188_v10 }
0x106f   :  { %3337 = vmatmul.mubr.msk.f32.gmra.mrb[34].mxu1 %vm1112_vm2, %v2189_v54 }
0x1070   :  { %3364 = vmatprep.mubr.msk.f32.mxu1 %vm105_vm0, %v2462_v59 }
0x113e   :  { %v3335_v53 = vpop.f32.mrb[32].mxu1 }
0x113f   :  { %v2297_v2 = vadd.f32 %v3335_v53, %v3299_v6  ;;  %v2277_v48 = vpop.f32.mrb[33].mxu1 }
0x1140   :  { %v2296_v51 = vadd.f32 %v2277_v48, %v2065_v14 }
0x1142   :  { %v3695_v29 = vpack.c.bf16 %v2297_v2, %v2296_v51  ;;  %v3338_v27 = vpop.f32.mrb[34].mxu1 }
0x1143   :  { %v2299_v25 = vadd.f32 %v3338_v27, %v3302_v4  ;;  %v2287_v46 = vpop.f32.mrb[35].mxu1 }
0x1144   :  { %v2298_v7 = vadd.f32 %v2287_v46, %v2075_v62  ;;  %3696 = vmatprep.subr.bf16.mxu0 %v3695_v29 }
0x1145   :  { %3698 = vmatpush3.bf16.msra.mxu0 %v3695_v29 }
0x1146   :  { %v3699_v47 = vpack.c.bf16 %v2299_v25, %v2298_v7  ;;  %v2461_v7 = vld [vmem:[%s4991_s8 + $0x8] sm:$0xff] }
0x1148   :  { %3700 = vmatprep.subr.bf16.mxu0 %v3699_v47 }
0x1149   :  { %3702 = vmatpush3.bf16.msra.mxu0 %v3699_v47  ;;  %v2463_v47 = vld [vmem:[%s4991_s8 + $0x18] sm:$0xff]  ;;  %s3921_s8 = scalar_lea.vmem %s2571_s4, 512 }
0x114a   :  { %p3922_p0 = scmp.ne.s32.totalorder %s2571_s4, %s3921_s8  ;;  %p3927_p2 = scmp.lt.s32.totalorder %s3921_s8, %s3921_s8 }
0x114c   :  { %3348 = vmatmul.mubr.msk.f32.vlgmr.msra.gmra.mrb[32].mxu0 %vm105_vm0, %v4593_v11  ;;  %p3928_p3 = por %p3927_p2, %p3926_p1 }
0x114d   :  { %3350 = vmatprep.mubr.msk.f32.mxu0 %vm105_vm0, %v4598_v5 }
0x114e   :  { %p3929_p4 = pnand %p3928_p3, %p3922_p0 }
0x1150   :  { %3351 = vmatmul.mubr.msk.f32.gmra.mrb[34].mxu0 %vm105_vm0, %v4607_v13 }
0x1151   :  { %3361 = vmatprep.mubr.msk.f32.mxu0 %vm105_vm0, %v2460_v18 }
0x121f   :  { %v3349_v31 = vpop.f32.mrb[32].mxu0 }
0x1220   :  { %v2366_v30 = vpop.f32.mrb[33].mxu0  ;;  %v2388_v63 = vsel %vm105_vm0, %v3349_v31, 0.0 }
0x1221   :  { %2389 = vadd.xlane.f32.xlu1 %v2388_v63  ;;  %v2385_v26 = vsel %vm105_vm0, %v2366_v30, 0.0 }
0x1222   :  { %2386 = vadd.xlane.f32.xlu0 %v2385_v26 }
0x1223   :  { %v3352_v3 = vpop.f32.mrb[34].mxu0 }
0x1224   :  { %v2376_v28 = vpop.f32.mrb[35].mxu0  ;;  %v2394_v11 = vsel %vm105_vm0, %v3352_v3, 0.0 }
0x1225   :  { %v2391_v36 = vsel %vm105_vm0, %v2376_v28, 0.0 }
0x1226   :  { %2392 = vadd.xlane.f32.xlu0 %v2391_v36 }
0x122a   :  { %2395 = vadd.xlane.f32.xlu0 %v2394_v11 }
0x12ae   :  { %v2390_v5 = vpop.xlane.xlu1 %2389 }
0x12af   :  { %v2399_v34 = vmul.f32 0.03125, %v2390_v5  ;;  %v2387_v60 = vpop.xlane.xlu0 %2386 }
0x12b0   :  { %v2398_v13 = vmul.f32 0.03125, %v2387_v60 }
0x12b1   :  { %v2403_v33 = vsub.f32 %v3349_v31, %v2399_v34 }
0x12b2   :  { %v2402_v32 = vsub.f32 %v2366_v30, %v2398_v13 }
0x12b3   :  { %v2393_v24 = vpop.xlane.xlu0 %2392  ;;  %v2407_v61 = vmul.f32 %v2403_v33, %v2403_v33 }
0x12b4   :  { %v2400_v56 = vmul.f32 0.03125, %v2393_v24  ;;  %v2406_v50 = vmul.f32 %v2402_v32, %v2402_v32 }
0x12b5   :  { %v2413_v45 = vsel %vm105_vm0, %v2407_v61, 0.0 }
0x12b6   :  { %v2404_v16 = vsub.f32 %v2376_v28, %v2400_v56  ;;  %2414 = vadd.xlane.f32.xlu0 %v2413_v45  ;;  %v2410_v38 = vsel %vm105_vm0, %v2406_v50, 0.0 }
0x12b7   :  { %2411 = vadd.xlane.f32.xlu1 %v2410_v38  ;;  %v2396_v42 = vpop.xlane.xlu0 %2395 }
0x12b8   :  { %v2401_v41 = vmul.f32 0.03125, %v2396_v42  ;;  %v2408_v43 = vmul.f32 %v2404_v16, %v2404_v16 }
0x12ba   :  { %v2405_v58 = vsub.f32 %v3352_v3, %v2401_v41  ;;  %v2416_v52 = vsel %vm105_vm0, %v2408_v43, 0.0 }
0x12bb   :  { %2417 = vadd.xlane.f32.xlu1 %v2416_v52 }
0x12bc   :  { %v2409_v57 = vmul.f32 %v2405_v58, %v2405_v58 }
0x12be   :  { %v2419_v12 = vsel %vm105_vm0, %v2409_v57, 0.0 }
0x12bf   :  { %2420 = vadd.xlane.f32.xlu0 %v2419_v12 }
0x1343   :  { %v2415_v21 = vpop.xlane.xlu0 %2414 }
0x1344   :  { %v2423_v37 = vmul.f32 0.03125, %v2415_v21  ;;  %v2412_v23 = vpop.xlane.xlu1 %2411 }
0x1345   :  { %v2422_v20 = vmul.f32 0.03125, %v2412_v23 }
0x1346   :  { %v2427_v49 = vadd.f32 1e-05, %v2423_v37 }
0x1347   :  { %v2426_v8 = vadd.f32 1e-05, %v2422_v20 }
0x1348   :  { %3913 = vrsqrt.f32 %v2427_v49  ;;  %v2418_v19 = vpop.xlane.xlu1 %2417 }
0x1349   :  { %3915 = vrsqrt.f32 %v2426_v8  ;;  %v2424_v17 = vmul.f32 0.03125, %v2418_v19 }
0x134b   :  { %v2428_v9 = vadd.f32 1e-05, %v2424_v17 }
0x134c   :  { %v2421_v6 = vpop.xlane.xlu0 %2420 }
0x134d   :  { %3917 = vrsqrt.f32 %v2428_v9  ;;  %v2425_v14 = vmul.f32 0.03125, %v2421_v6 }
0x134f   :  { %v2429_v4 = vadd.f32 1e-05, %v2425_v14 }
0x1351   :  { %3919 = vrsqrt.f32 %v2429_v4 }
0x1352   :  { %v3914_v62 = vpop.eup %3913 }
0x1353   :  { %v3916_v0 = vpop.eup %3915  ;;  %v2435_v55 = vmul.f32 %v3914_v62, %v2403_v33 }
0x1354   :  { %v2434_v39 = vmul.f32 %v3916_v0, %v2402_v32 }
0x1355   :  { %v2446_v22 = vmul.f32 %v2703_v1, %v2435_v55 }
0x1356   :  { %v2445_v15 = vmul.f32 %v2703_v1, %v2434_v39 }
0x1357   :  { %v3918_v44 = vpop.eup %3917  ;;  %v2457_v40 = vadd.f32 %v2704_v35, %v2446_v22 }
0x1358   :  { %v2436_v10 = vmul.f32 %v3918_v44, %v2404_v16  ;;  %v2456_v54 = vadd.f32 %v2704_v35, %v2445_v15 }
0x135a   :  { %v3703_v53 = vpack.c.bf16 %v2457_v40, %v2456_v54  ;;  %v2447_v51 = vmul.f32 %v2703_v1, %v2436_v10 }
0x135b   :  { %v3920_v2 = vpop.eup %3919 }
0x135c   :  { %v2437_v48 = vmul.f32 %v3920_v2, %v2405_v58  ;;  %3704 = vmatprep.subr.bf16.mxu0 %v3703_v53  ;;  %3711 = vmatprep.subr.bf16.mxu1 %v3703_v53  ;;  %v2458_v27 = vadd.f32 %v2704_v35, %v2447_v51 }
0x135d   :  { %3706 = vmatpush3.bf16.msra.mxu0 %v3703_v53  ;;  %3713 = vmatpush3.bf16.msra.mxu1 %v3703_v53 }
0x135e   :  { %v2448_v29 = vmul.f32 %v2703_v1, %v2437_v48 }
0x1360   :  { %v2459_v25 = vadd.f32 %v2704_v35, %v2448_v29 }
0x1362   :  { %v3707_v46 = vpack.c.bf16 %v2459_v25, %v2458_v27 }
0x1364   :  { %3708 = vmatprep.subr.bf16.mxu0 %v3707_v46  ;;  %3712 = vmatprep.subr.bf16.mxu1 %v3707_v46 }
0x1365   :  { %3710 = vmatpush3.bf16.msra.mxu0 %v3707_v46  ;;  %3714 = vmatpush3.bf16.msra.mxu1 %v3707_v46 }
0x1368   :  { %3362 = vmatmul.mubr.msk.f32.vlgmr.msra.gmra.mrb[36].mxu0 %vm105_vm0, %v2461_v7  ;;  %3365 = vmatmul.mubr.msk.f32.vlgmr.msra.gmra.mrb[36].mxu1 %vm105_vm0, %v2463_v47 }
0x143b   :  { %v3363_v31 = vpop.f32.mrb[36].mxu0  ;;  %v3366_v30 = vpop.f32.mrb[36].mxu1 }
0x143c   :  { %2562 = vst.msk [vmem:[#allocation2 + $0x8] sm:$0xff] %vm105_vm0, %v3363_v31  ;;  %2564 = vst.msk [vmem:[#allocation2 + $0x18] sm:$0xff] %vm105_vm0, %v3366_v30  ;;  %v2542_v63 = vpop.f32.mrb[37].mxu0  ;;  %v2552_v26 = vpop.f32.mrb[37].mxu1 }
0x143d   :  { %2561 = vst.msk [vmem:[#allocation2] sm:$0xff] %vm105_vm0, %v2542_v63  ;;  %2563 = vst.msk [vmem:[#allocation2 + $0x10] sm:$0xff] %vm105_vm0, %v2552_v26 }
0x143e   :  { %3932 = shalt.err (!%p3929_p4)
}
0x143f   :  { %s3933_s9 = scalar_lea.hbm %s4997_s14, 512 }
0x1440   :  { %p3934_p5 = scmp.ne.s32.totalorder %s4997_s14, %s3933_s9  ;;  %p3937_p6 = scmp.lt.u32.totalorder %s3933_s9, %s4997_s14 }
0x1442   :  { %p3939_p7 = pnand %p3937_p6, %p3934_p5 }
0x1444   :  { %3942 = shalt.err (!%p3939_p7)
}
0x1445   :  { %s3949_s3 = smov 128   ;;  %s3950_s25 = smov 8  }
0x1446   :  { %2576 = dma.vmem_to_hbm [thread:$0]  %s2571_s4, 512, %s4997_s14, [#allocation3], %s3949_s3, %s3949_s3, %s3950_s25  }
0x1447   :  { %3943 = dma.done.wait [#allocation3], 512  }
0x1448   :  { %3944 = vsyncadd [#allocation3], 4294966784 }
0x1449   :  { %2584 = vsyncpa [#allocation3], 1 }

</bundles_post_ra>
